<compile_context>
chip_gen: v7x
topology: tpu7x:2x2x1
jax: 0.10.0
libtpu: 0.0.40
codegen_flags: <defaults>
</compile_context>

<pallas_src>
import functools

import jax
import jax.numpy as jnp
from jax.experimental import pallas as pl
from jax.experimental.pallas import tpu as pltpu


# --------------------------------------------------------------------------
# Pallas kernel: affine warp (bilinear for image, nearest for mask),
# padding_mode='zeros'.
# --------------------------------------------------------------------------
def _warp_kernel(affine_ref, img_ref, mask_ref, img_out_ref, mask_out_ref,
                 *, H, W, TILE_O, Bt):
    HW = H * W
    bb = pl.program_id(0)        # batch-tile index
    t = pl.program_id(1)         # output-pixel tile index

    # Flattened *input*-pixel index runs along axis 0 (rows of A^T); reused for
    # both the bilinear and nearest matrices of every batch element in this step.
    rows = jax.lax.broadcasted_iota(jnp.int32, (HW, TILE_O), 0)

    # Destination pixel coordinates for this output tile as a (1, TILE_O) row
    # vector.  Avoid non-power-of-two integer div/mod: y = floor((i + 0.5)/W).
    out_idx = t * TILE_O + jax.lax.broadcasted_iota(jnp.int32, (1, TILE_O), 1)
    idx_f = out_idx.astype(jnp.float32)
    y_out = jnp.floor((idx_f + 0.5) * (1.0 / W))
    x_out = idx_f - y_out * float(W)

    # Static unroll over the (small, compile-time) per-step batch count.
    for j in range(Bt):
        b = bb * Bt + j
        # per-batch 2x3 "dst pixel -> src pixel" affine (grid_sample conventions
        # already folded in on the host side)
        a00 = affine_ref[b, 0]
        a01 = affine_ref[b, 1]
        a02 = affine_ref[b, 2]
        a10 = affine_ref[b, 3]
        a11 = affine_ref[b, 4]
        a12 = affine_ref[b, 5]

        src_x = a00 * x_out + a01 * y_out + a02            # (1, TILE_O)
        src_y = a10 * x_out + a11 * y_out + a12

        x0 = jnp.floor(src_x)
        y0 = jnp.floor(src_y)
        dx = src_x - x0
        dy = src_y - y0
        x0i = x0.astype(jnp.int32)
        y0i = y0.astype(jnp.int32)

        # Single delta against the (unclamped) top-left flat index.  The four
        # bilinear taps live at fixed offsets {0, 1, W, W+1}; per-tap OOB
        # validity is folded into (1, TILE_O) weights, so zero-weight taps that
        # wrap onto a wrong-but-valid row contribute nothing.
        flat00 = y0i * W + x0i                             # (1, TILE_O)
        delta = rows - flat00                              # (HW, TILE_O)

        vx0 = (x0i >= 0) & (x0i < W)
        vx1 = (x0i >= -1) & (x0i < W - 1)                  # x0i + 1 in [0, W)
        vy0 = (y0i >= 0) & (y0i < H)
        vy1 = (y0i >= -1) & (y0i < H - 1)                  # y0i + 1 in [0, H)

        zero = jnp.float32(0.0)
        w00 = jnp.where(vx0 & vy0, (1.0 - dx) * (1.0 - dy), zero)
        w01 = jnp.where(vx1 & vy0, dx * (1.0 - dy), zero)
        w10 = jnp.where(vx0 & vy1, (1.0 - dx) * dy, zero)
        w11 = jnp.where(vx1 & vy1, dx * dy, zero)

        a_bil = (jnp.where(delta == 0, w00, zero)
                 + jnp.where(delta == 1, w01, zero)
                 + jnp.where(delta == W, w10, zero)
                 + jnp.where(delta == W + 1, w11, zero))   # (HW, TILE_O)

        # Nearest neighbour (mask), round-half-to-even (== torch nearbyint),
        # built from the already-available floor/frac of the bilinear path so
        # no lax.round lowering is needed.
        up_x = ((dx > 0.5) | ((dx == 0.5) & ((x0i & 1) == 1))).astype(jnp.int32)
        up_y = ((dy > 0.5) | ((dy == 0.5) & ((y0i & 1) == 1))).astype(jnp.int32)
        xn = x0i + up_x
        yn = y0i + up_y
        vn = (xn >= 0) & (xn < W) & (yn >= 0) & (yn < H)
        w_nn = jnp.where(vn, jnp.float32(1.0), zero)
        off_nn = up_x + up_y * W                           # in {0, 1, W, W+1}
        a_nn = jnp.where(delta == off_nn, w_nn, zero)      # (HW, TILE_O)

        # out[c, o] = sum_i in[c, i] * A[i, o] -- plain (C,HW)x(HW,TILE_O)
        # matmul, contracting LHS dim 1 with RHS dim 0 (no RHS relayout).
        # Keep (C on sublanes, pixels on lanes) orientation for lane-dense stores.
        dn = (((1,), (0,)), ((), ()))
        img_in = img_ref[j]                                # (C, HW)
        mask_in = mask_ref[j]                              # (Cm, HW)
        a_img = a_bil.astype(jnp.bfloat16) if img_in.dtype == jnp.bfloat16 else a_bil
        a_msk = a_nn.astype(jnp.bfloat16) if mask_in.dtype == jnp.bfloat16 else a_nn
        img_out_ref[j] = jax.lax.dot_general(
            img_in, a_img, dn, preferred_element_type=jnp.float32
        ).astype(img_out_ref.dtype)
        mask_out_ref[j] = jax.lax.dot_general(
            mask_in, a_msk, dn, preferred_element_type=jnp.float32
        ).astype(mask_out_ref.dtype)


def _pick_tile_o(HW, budget_bytes=4 << 20):
    """Largest multiple of 128 dividing HW keeping one (HW, tile_o) f32 matrix
    tile under ~budget_bytes (sized for v7x's 64 MiB VMEM); else untiled."""
    if HW % 128 != 0:
        # TODO(synk): HW not 128-aligned -> single untiled matrix (fine for small images).
        return HW
    cap = max(128, (budget_bytes // 4) // HW)
    cap = (cap // 128) * 128
    if cap >= HW:
        return HW
    best = 128
    t = 128
    while t <= cap:
        if HW % t == 0:
            best = t
        t += 128
    return best


def _pick_bt(B, HW, num_tiles, max_bt=8):
    """Batch several small images per grid step to amortize per-step overhead,
    but keep >= 2 grid programs so megacore sharding still gets work."""
    if HW > 4096 or B <= 1:
        return 1
    bt = 1
    for cand in range(2, min(B, max_bt) + 1):
        if B % cand == 0 and (B // cand) * num_tiles >= 2:
            bt = cand
    return bt


def warp_affine_pallas(img, mask, affine6, *, tile_o=None, max_bt=8):
    """img: (B,C,H,W), mask: (B,Cm,H,W), affine6: (B,6) dst->src pixel affine."""
    B, C, H, W = img.shape
    Cm = mask.shape[1]
    HW = H * W
    img_f = img.reshape(B, C, HW)
    mask_f = mask.reshape(B, Cm, HW)

    if tile_o is None:
        tile_o = _pick_tile_o(HW)
    num_tiles = HW // tile_o
    bt = _pick_bt(B, HW, num_tiles, max_bt=max_bt)

    # Explicit VMEM budget hint (matrix tiles + double-buffered I/O), clamped to
    # stay within the smallest generation (v7x, 64 MiB per TensorCore).
    itemsize = jnp.dtype(img.dtype).itemsize
    matrix_bytes = HW * tile_o * 4
    io_bytes = 2 * bt * (C + Cm) * (HW + tile_o) * itemsize
    vmem_limit = int(min(64 << 20, max(16 << 20, 10 * matrix_bytes + 2 * io_bytes)))
    # TODO(synk): very large images (H*W >= ~64k) would want a gather-based warp
    # instead of the one-hot-matmul formulation; this path targets crop-sized inputs.

    kernel = functools.partial(_warp_kernel, H=H, W=W, TILE_O=tile_o, Bt=bt)
    out_img, out_mask = pl.pallas_call(
        kernel,
        grid=(B // bt, num_tiles),
        in_specs=[
            pl.BlockSpec(memory_space=pltpu.MemorySpace.SMEM),       # (B, 6) affine params
            pl.BlockSpec((bt, C, HW), lambda b, t: (b, 0, 0)),       # image slab (re-used across t)
            pl.BlockSpec((bt, Cm, HW), lambda b, t: (b, 0, 0)),      # mask slab
        ],
        out_specs=(
            pl.BlockSpec((bt, C, tile_o), lambda b, t: (b, 0, t)),
            pl.BlockSpec((bt, Cm, tile_o), lambda b, t: (b, 0, t)),
        ),
        out_shape=(
            jax.ShapeDtypeStruct((B, C, HW), img.dtype),
            jax.ShapeDtypeStruct((B, Cm, HW), mask.dtype),
        ),
        compiler_params=pltpu.CompilerParams(
            dimension_semantics=("parallel", "parallel"),
            vmem_limit_bytes=vmem_limit,
        ),
    )(affine6.astype(jnp.float32), img_f, mask_f)
    return out_img.reshape(B, C, H, W), out_mask.reshape(B, Cm, H, W)


# --------------------------------------------------------------------------
# Module glue: parameter generation (JAX) mirroring the PyTorch module.
# --------------------------------------------------------------------------
def _adapted_uniform(key, shape, low, high):
    # rand(shape) * (high - low) + low     (same_on_batch=False path)
    return jax.random.uniform(key, shape, dtype=jnp.float32) * (high - low) + low


class RandomAffineAroundTargetPallas:
    def __init__(self, degrees=15.0, translate=(0.1, 0.1), scale=(0.9, 1.1),
                 shear=None, align_corners=False, p=0.5):
        # TODO(synk): shear path not instantiated — the reference calls
        # KGT.get_shear_matrix2d(center, shear_factors(B,2)) against an (sx, sy)
        # signature, which is ambiguous; shear must be None here.
        # TODO(synk): only the default BILINEAR image resample is implemented.
        assert shear is None
        self.degrees = float(degrees)
        self.translate = translate
        self.scale = scale
        self.align_corners = align_corners
        self.p = p

    def generate_parameters(self, batch_shape, center_s, key):
        B, C, H, W = batch_shape
        k_ang, k_tx, k_ty, k_sc = jax.random.split(key, 4)
        zeros = jnp.zeros((B,), jnp.float32)
        ones = jnp.ones((B,), jnp.float32)
        cx = center_s[:, 0].astype(jnp.float32)
        cy = center_s[:, 1].astype(jnp.float32)

        # rotation around center (reproduces the reference's double deg2rad:
        # deg2rad(angle) is fed to get_rotation_matrix2d which deg2rad's again)
        angle = _adapted_uniform(k_ang, (B,), -self.degrees, self.degrees)
        theta = jnp.deg2rad(jnp.deg2rad(angle))
        ca, sa = jnp.cos(theta), jnp.sin(theta)
        M = jnp.stack([
            jnp.stack([ca, sa, cx - ca * cx - sa * cy], -1),
            jnp.stack([-sa, ca, cy + sa * cx - ca * cy], -1),
            jnp.stack([zeros, zeros, ones], -1)], axis=1)            # (B,3,3)

        if self.translate is not None:
            max_dx = self.translate[0] * W
            max_dy = self.translate[1] * H
            tx = _adapted_uniform(k_tx, (B,), -max_dx, max_dx)
            ty = _adapted_uniform(k_ty, (B,), -max_dy, max_dy)
            T = jnp.stack([
                jnp.stack([ones, zeros, tx], -1),
                jnp.stack([zeros, ones, ty], -1),
                jnp.stack([zeros, zeros, ones], -1)], axis=1)
            M = T @ M

        if self.scale is not None:
            s = _adapted_uniform(k_sc, (B,), self.scale[0], self.scale[1])
            S = jnp.stack([
                jnp.stack([s, zeros, cx * (1.0 - s)], -1),
                jnp.stack([zeros, s, cy * (1.0 - s)], -1),
                jnp.stack([zeros, zeros, ones], -1)], axis=1)
            M = S @ M

        return M  # (B,3,3) src-pixel -> dst-pixel affine

    def _affine6(self, M, H, W):
        # kornia warp_affine == grid_sample(affine_grid(inv(normalized M))).
        # Composing normalize_homography ((size-1) convention) with the
        # affine_grid / grid_sample align_corners conventions gives, in pixel
        # space (output size == input size):
        #   align_corners=True :  src = A dst + b
        #   align_corners=False:  src = (E A D)(dst + 0.5) + E b - 0.5
        # with A,b the linear/offset parts of M^{-1},
        # E = diag(W/(W-1), H/(H-1)), D = diag((W-1)/W, (H-1)/H).
        Minv = jnp.linalg.inv(M)
        A = Minv[:, :2, :2]                                # (B,2,2)
        b = Minv[:, :2, 2]                                 # (B,2)
        if self.align_corners:
            L = A
            c = b
        else:
            e = jnp.array([W / (W - 1.0), H / (H - 1.0)], jnp.float32)
            d = jnp.array([(W - 1.0) / W, (H - 1.0) / H], jnp.float32)
            L = e[None, :, None] * A * d[None, None, :]    # (B,2,2)
            c = 0.5 * L.sum(axis=-1) + e[None, :] * b - 0.5
        return jnp.concatenate(
            [L[:, 0, :], c[:, 0:1], L[:, 1, :], c[:, 1:2]], axis=-1)   # (B,6)

    def __call__(self, img_s, mask_s, center_s, key):
        B, C, H, W = img_s.shape
        k_p, k_params = jax.random.split(key)
        M = self.generate_parameters(img_s.shape, center_s, k_params)
        aff6 = self._affine6(M, H, W)
        img_w, mask_w = warp_affine_pallas(img_s, mask_s, aff6)
        # p-gate (torch.rand(1) < p in the reference) -> select between warped / original
        apply = jax.random.uniform(k_p, ()) < self.p
        img_out = jnp.where(apply, img_w, img_s)
        mask_out = jnp.where(apply, mask_w, mask_s)
        return img_out, mask_out


if __name__ == "__main__":
    key = jax.random.PRNGKey(0)
    k_img, k_mask, k_center, k_fwd = jax.random.split(key, 4)

    B, C, H, W = 2, 4, 16, 16
    img = jax.random.normal(k_img, (B, C, H, W), dtype=jnp.float32)
    mask = (jax.random.uniform(k_mask, (B, 1, H, W)) > 0.5).astype(jnp.float32)
    center = jnp.stack(
        [jnp.full((B,), (W - 1) / 2.0, jnp.float32),
         jnp.full((B,), (H - 1) / 2.0, jnp.float32)], axis=-1
    ) + jax.random.uniform(k_center, (B, 2), minval=-2.0, maxval=2.0)

    # Identity-warp sanity check: affine6 = [1,0,0, 0,1,0] must reproduce inputs.
    aff_id = jnp.tile(jnp.array([[1., 0., 0., 0., 1., 0.]], jnp.float32), (B, 1))
    img_id, mask_id = warp_affine_pallas(img, mask, aff_id)
    jax.block_until_ready((img_id, mask_id))
    assert jnp.allclose(img_id, img, atol=1e-4), "identity warp mismatch (img)"
    assert jnp.allclose(mask_id, mask, atol=1e-4), "identity warp mismatch (mask)"

    aug = RandomAffineAroundTargetPallas(
        degrees=15.0, translate=(0.1, 0.1), scale=(0.9, 1.1),
        shear=None, align_corners=False, p=0.5)

    img_out, mask_out = aug(img, mask, center, k_fwd)
    jax.block_until_ready((img_out, mask_out))
    assert img_out.shape == img.shape and img_out.dtype == img.dtype
    assert mask_out.shape == mask.shape and mask_out.dtype == mask.dtype
    print("KERNEL_OK")
</pallas_src>

<mosaic_0001>
module attributes {stable_mosaic.version = 11 : i64} {
  func.func @_warp_kernel(%arg0: i32, %arg1: i32, %arg2: memref<2x6xf32, #tpu.memory_space<smem>>, %arg3: memref<1x4x256xf32, #tpu.memory_space<vmem>>, %arg4: memref<1x1x256xf32, #tpu.memory_space<vmem>>, %arg5: memref<1x4x256xf32, #tpu.memory_space<vmem>>, %arg6: memref<1x1x256xf32, #tpu.memory_space<vmem>>) attributes {dimension_semantics = [#tpu.dimension_semantics<parallel>, #tpu.dimension_semantics<parallel>], iteration_bounds = array<i64: 2, 1>, scalar_prefetch = 0 : i64, scratch_operands = 0 : i64, tpu.core_type = #tpu.core_type<tc>, window_params = [{transform_indices = @transform_0, window_bounds = array<i64: 2, 6>}, {transform_indices = @transform_1, window_bounds = array<i64: 1, 4, 256>}, {transform_indices = @transform_2, window_bounds = array<i64: 1, 1, 256>}, {transform_indices = @transform_3, window_bounds = array<i64: 1, 4, 256>}, {transform_indices = @transform_4, window_bounds = array<i64: 1, 1, 256>}]} {
    %0 = tpu.iota {dimensions = array<i32: 0>} : vector<256x256xi32>
    %c256_i32 = arith.constant 256 : i32
    %1 = arith.muli %arg1, %c256_i32 : i32
    %2 = tpu.iota {dimensions = array<i32: 1>} : vector<1x256xi32>
    %3 = vector.broadcast %1 : i32 to vector<1x256xi32>
    %4 = arith.addi %3, %2 : vector<1x256xi32>
    %5 = arith.sitofp %4 : vector<1x256xi32> to vector<1x256xf32>
    %cst = arith.constant 5.000000e-01 : f32
    %6 = vector.broadcast %cst : f32 to vector<1x256xf32>
    %7 = arith.addf %5, %6 : vector<1x256xf32>
    %cst_0 = arith.constant 6.250000e-02 : f32
    %8 = vector.broadcast %cst_0 : f32 to vector<1x256xf32>
    %9 = arith.mulf %7, %8 : vector<1x256xf32>
    %10 = math.floor %9 : vector<1x256xf32>
    %cst_1 = arith.constant 1.600000e+01 : f32
    %11 = vector.broadcast %cst_1 : f32 to vector<1x256xf32>
    %12 = arith.mulf %10, %11 : vector<1x256xf32>
    %13 = arith.subf %5, %12 : vector<1x256xf32>
    %c1_i32 = arith.constant 1 : i32
    %14 = arith.muli %arg0, %c1_i32 : i32
    %c0_i32 = arith.constant 0 : i32
    %15 = arith.addi %14, %c0_i32 : i32
    %16 = arith.index_cast %15 : i32 to index
    %c0 = arith.constant 0 : index
    %17 = memref.load %arg2[%16, %c0] : memref<2x6xf32, #tpu.memory_space<smem>>
    %18 = arith.index_cast %15 : i32 to index
    %c1 = arith.constant 1 : index
    %19 = memref.load %arg2[%18, %c1] : memref<2x6xf32, #tpu.memory_space<smem>>
    %20 = arith.index_cast %15 : i32 to index
    %c2 = arith.constant 2 : index
    %21 = memref.load %arg2[%20, %c2] : memref<2x6xf32, #tpu.memory_space<smem>>
    %22 = arith.index_cast %15 : i32 to index
    %c3 = arith.constant 3 : index
    %23 = memref.load %arg2[%22, %c3] : memref<2x6xf32, #tpu.memory_space<smem>>
    %24 = arith.index_cast %15 : i32 to index
    %c4 = arith.constant 4 : index
    %25 = memref.load %arg2[%24, %c4] : memref<2x6xf32, #tpu.memory_space<smem>>
    %26 = arith.index_cast %15 : i32 to index
    %c5 = arith.constant 5 : index
    %27 = memref.load %arg2[%26, %c5] : memref<2x6xf32, #tpu.memory_space<smem>>
    %28 = vector.broadcast %17 : f32 to vector<1x256xf32>
    %29 = arith.mulf %28, %13 : vector<1x256xf32>
    %30 = vector.broadcast %19 : f32 to vector<1x256xf32>
    %31 = arith.mulf %30, %10 : vector<1x256xf32>
    %32 = arith.addf %29, %31 : vector<1x256xf32>
    %33 = vector.broadcast %21 : f32 to vector<1x256xf32>
    %34 = arith.addf %32, %33 : vector<1x256xf32>
    %35 = vector.broadcast %23 : f32 to vector<1x256xf32>
    %36 = arith.mulf %35, %13 : vector<1x256xf32>
    %37 = vector.broadcast %25 : f32 to vector<1x256xf32>
    %38 = arith.mulf %37, %10 : vector<1x256xf32>
    %39 = arith.addf %36, %38 : vector<1x256xf32>
    %40 = vector.broadcast %27 : f32 to vector<1x256xf32>
    %41 = arith.addf %39, %40 : vector<1x256xf32>
    %42 = math.floor %34 : vector<1x256xf32>
    %43 = math.floor %41 : vector<1x256xf32>
    %44 = arith.subf %34, %42 : vector<1x256xf32>
    %45 = arith.subf %41, %43 : vector<1x256xf32>
    %46 = arith.fptosi %42 : vector<1x256xf32> to vector<1x256xi32>
    %47 = arith.fptosi %43 : vector<1x256xf32> to vector<1x256xi32>
    %c16_i32 = arith.constant 16 : i32
    %48 = vector.broadcast %c16_i32 : i32 to vector<1x256xi32>
    %49 = arith.muli %47, %48 : vector<1x256xi32>
    %50 = arith.addi %49, %46 : vector<1x256xi32>
    %51 = vector.broadcast %50 : vector<1x256xi32> to vector<256x256xi32>
    %52 = arith.subi %0, %51 : vector<256x256xi32>
    %c0_i32_2 = arith.constant 0 : i32
    %53 = vector.broadcast %c0_i32_2 : i32 to vector<1x256xi32>
    %54 = arith.cmpi sge, %46, %53 : vector<1x256xi32>
    %c16_i32_3 = arith.constant 16 : i32
    %55 = vector.broadcast %c16_i32_3 : i32 to vector<1x256xi32>
    %56 = arith.cmpi slt, %46, %55 : vector<1x256xi32>
    %57 = arith.andi %54, %56 : vector<1x256xi1>
    %c-1_i32 = arith.constant -1 : i32
    %58 = vector.broadcast %c-1_i32 : i32 to vector<1x256xi32>
    %59 = arith.cmpi sge, %46, %58 : vector<1x256xi32>
    %c15_i32 = arith.constant 15 : i32
    %60 = vector.broadcast %c15_i32 : i32 to vector<1x256xi32>
    %61 = arith.cmpi slt, %46, %60 : vector<1x256xi32>
    %62 = arith.andi %59, %61 : vector<1x256xi1>
    %c0_i32_4 = arith.constant 0 : i32
    %63 = vector.broadcast %c0_i32_4 : i32 to vector<1x256xi32>
    %64 = arith.cmpi sge, %47, %63 : vector<1x256xi32>
    %c16_i32_5 = arith.constant 16 : i32
    %65 = vector.broadcast %c16_i32_5 : i32 to vector<1x256xi32>
    %66 = arith.cmpi slt, %47, %65 : vector<1x256xi32>
    %67 = arith.andi %64, %66 : vector<1x256xi1>
    %c-1_i32_6 = arith.constant -1 : i32
    %68 = vector.broadcast %c-1_i32_6 : i32 to vector<1x256xi32>
    %69 = arith.cmpi sge, %47, %68 : vector<1x256xi32>
    %c15_i32_7 = arith.constant 15 : i32
    %70 = vector.broadcast %c15_i32_7 : i32 to vector<1x256xi32>
    %71 = arith.cmpi slt, %47, %70 : vector<1x256xi32>
    %72 = arith.andi %69, %71 : vector<1x256xi1>
    %73 = arith.andi %57, %67 : vector<1x256xi1>
    %cst_8 = arith.constant 1.000000e+00 : f32
    %74 = vector.broadcast %cst_8 : f32 to vector<1x256xf32>
    %75 = arith.subf %74, %44 : vector<1x256xf32>
    %cst_9 = arith.constant 1.000000e+00 : f32
    %76 = vector.broadcast %cst_9 : f32 to vector<1x256xf32>
    %77 = arith.subf %76, %45 : vector<1x256xf32>
    %78 = arith.mulf %75, %77 : vector<1x256xf32>
    %cst_10 = arith.constant 0.000000e+00 : f32
    %79 = vector.broadcast %cst_10 : f32 to vector<1x256xf32>
    %80 = arith.select %73, %78, %79 : vector<1x256xi1>, vector<1x256xf32>
    %81 = arith.andi %62, %67 : vector<1x256xi1>
    %cst_11 = arith.constant 1.000000e+00 : f32
    %82 = vector.broadcast %cst_11 : f32 to vector<1x256xf32>
    %83 = arith.subf %82, %45 : vector<1x256xf32>
    %84 = arith.mulf %44, %83 : vector<1x256xf32>
    %cst_12 = arith.constant 0.000000e+00 : f32
    %85 = vector.broadcast %cst_12 : f32 to vector<1x256xf32>
    %86 = arith.select %81, %84, %85 : vector<1x256xi1>, vector<1x256xf32>
    %87 = arith.andi %57, %72 : vector<1x256xi1>
    %cst_13 = arith.constant 1.000000e+00 : f32
    %88 = vector.broadcast %cst_13 : f32 to vector<1x256xf32>
    %89 = arith.subf %88, %44 : vector<1x256xf32>
    %90 = arith.mulf %89, %45 : vector<1x256xf32>
    %cst_14 = arith.constant 0.000000e+00 : f32
    %91 = vector.broadcast %cst_14 : f32 to vector<1x256xf32>
    %92 = arith.select %87, %90, %91 : vector<1x256xi1>, vector<1x256xf32>
    %93 = arith.andi %62, %72 : vector<1x256xi1>
    %94 = arith.mulf %44, %45 : vector<1x256xf32>
    %cst_15 = arith.constant 0.000000e+00 : f32
    %95 = vector.broadcast %cst_15 : f32 to vector<1x256xf32>
    %96 = arith.select %93, %94, %95 : vector<1x256xi1>, vector<1x256xf32>
    %c0_i32_16 = arith.constant 0 : i32
    %97 = vector.broadcast %c0_i32_16 : i32 to vector<256x256xi32>
    %98 = arith.cmpi eq, %52, %97 : vector<256x256xi32>
    %cst_17 = arith.constant 0.000000e+00 : f32
    %99 = vector.shape_cast %80 : vector<1x256xf32> to vector<1x256xf32>
    %100 = vector.broadcast %99 : vector<1x256xf32> to vector<256x256xf32>
    %101 = vector.broadcast %cst_17 : f32 to vector<256x256xf32>
    %102 = arith.select %98, %100, %101 : vector<256x256xi1>, vector<256x256xf32>
    %c1_i32_18 = arith.constant 1 : i32
    %103 = vector.broadcast %c1_i32_18 : i32 to vector<256x256xi32>
    %104 = arith.cmpi eq, %52, %103 : vector<256x256xi32>
    %cst_19 = arith.constant 0.000000e+00 : f32
    %105 = vector.shape_cast %86 : vector<1x256xf32> to vector<1x256xf32>
    %106 = vector.broadcast %105 : vector<1x256xf32> to vector<256x256xf32>
    %107 = vector.broadcast %cst_19 : f32 to vector<256x256xf32>
    %108 = arith.select %104, %106, %107 : vector<256x256xi1>, vector<256x256xf32>
    %109 = arith.addf %102, %108 : vector<256x256xf32>
    %c16_i32_20 = arith.constant 16 : i32
    %110 = vector.broadcast %c16_i32_20 : i32 to vector<256x256xi32>
    %111 = arith.cmpi eq, %52, %110 : vector<256x256xi32>
    %cst_21 = arith.constant 0.000000e+00 : f32
    %112 = vector.shape_cast %92 : vector<1x256xf32> to vector<1x256xf32>
    %113 = vector.broadcast %112 : vector<1x256xf32> to vector<256x256xf32>
    %114 = vector.broadcast %cst_21 : f32 to vector<256x256xf32>
    %115 = arith.select %111, %113, %114 : vector<256x256xi1>, vector<256x256xf32>
    %116 = arith.addf %109, %115 : vector<256x256xf32>
    %c17_i32 = arith.constant 17 : i32
    %117 = vector.broadcast %c17_i32 : i32 to vector<256x256xi32>
    %118 = arith.cmpi eq, %52, %117 : vector<256x256xi32>
    %cst_22 = arith.constant 0.000000e+00 : f32
    %119 = vector.shape_cast %96 : vector<1x256xf32> to vector<1x256xf32>
    %120 = vector.broadcast %119 : vector<1x256xf32> to vector<256x256xf32>
    %121 = vector.broadcast %cst_22 : f32 to vector<256x256xf32>
    %122 = arith.select %118, %120, %121 : vector<256x256xi1>, vector<256x256xf32>
    %123 = arith.addf %116, %122 : vector<256x256xf32>
    %cst_23 = arith.constant 5.000000e-01 : f32
    %124 = vector.broadcast %cst_23 : f32 to vector<1x256xf32>
    %125 = arith.cmpf ogt, %44, %124 : vector<1x256xf32>
    %cst_24 = arith.constant 5.000000e-01 : f32
    %126 = vector.broadcast %cst_24 : f32 to vector<1x256xf32>
    %127 = arith.cmpf oeq, %44, %126 : vector<1x256xf32>
    %c1_i32_25 = arith.constant 1 : i32
    %128 = vector.broadcast %c1_i32_25 : i32 to vector<1x256xi32>
    %129 = arith.andi %46, %128 : vector<1x256xi32>
    %c1_i32_26 = arith.constant 1 : i32
    %130 = vector.broadcast %c1_i32_26 : i32 to vector<1x256xi32>
    %131 = arith.cmpi eq, %129, %130 : vector<1x256xi32>
    %132 = arith.andi %127, %131 : vector<1x256xi1>
    %133 = arith.ori %125, %132 : vector<1x256xi1>
    %134 = arith.extui %133 : vector<1x256xi1> to vector<1x256xi32>
    %cst_27 = arith.constant 5.000000e-01 : f32
    %135 = vector.broadcast %cst_27 : f32 to vector<1x256xf32>
    %136 = arith.cmpf ogt, %45, %135 : vector<1x256xf32>
    %cst_28 = arith.constant 5.000000e-01 : f32
    %137 = vector.broadcast %cst_28 : f32 to vector<1x256xf32>
    %138 = arith.cmpf oeq, %45, %137 : vector<1x256xf32>
    %c1_i32_29 = arith.constant 1 : i32
    %139 = vector.broadcast %c1_i32_29 : i32 to vector<1x256xi32>
    %140 = arith.andi %47, %139 : vector<1x256xi32>
    %c1_i32_30 = arith.constant 1 : i32
    %141 = vector.broadcast %c1_i32_30 : i32 to vector<1x256xi32>
    %142 = arith.cmpi eq, %140, %141 : vector<1x256xi32>
    %143 = arith.andi %138, %142 : vector<1x256xi1>
    %144 = arith.ori %136, %143 : vector<1x256xi1>
    %145 = arith.extui %144 : vector<1x256xi1> to vector<1x256xi32>
    %146 = arith.addi %46, %134 : vector<1x256xi32>
    %147 = arith.addi %47, %145 : vector<1x256xi32>
    %c0_i32_31 = arith.constant 0 : i32
    %148 = vector.broadcast %c0_i32_31 : i32 to vector<1x256xi32>
    %149 = arith.cmpi sge, %146, %148 : vector<1x256xi32>
    %c16_i32_32 = arith.constant 16 : i32
    %150 = vector.broadcast %c16_i32_32 : i32 to vector<1x256xi32>
    %151 = arith.cmpi slt, %146, %150 : vector<1x256xi32>
    %152 = arith.andi %149, %151 : vector<1x256xi1>
    %c0_i32_33 = arith.constant 0 : i32
    %153 = vector.broadcast %c0_i32_33 : i32 to vector<1x256xi32>
    %154 = arith.cmpi sge, %147, %153 : vector<1x256xi32>
    %155 = arith.andi %152, %154 : vector<1x256xi1>
    %c16_i32_34 = arith.constant 16 : i32
    %156 = vector.broadcast %c16_i32_34 : i32 to vector<1x256xi32>
    %157 = arith.cmpi slt, %147, %156 : vector<1x256xi32>
    %158 = arith.andi %155, %157 : vector<1x256xi1>
    %cst_35 = arith.constant 1.000000e+00 : f32
    %cst_36 = arith.constant 0.000000e+00 : f32
    %159 = vector.broadcast %cst_35 : f32 to vector<1x256xf32>
    %160 = vector.broadcast %cst_36 : f32 to vector<1x256xf32>
    %161 = arith.select %158, %159, %160 : vector<1x256xi1>, vector<1x256xf32>
    %c16_i32_37 = arith.constant 16 : i32
    %162 = vector.broadcast %c16_i32_37 : i32 to vector<1x256xi32>
    %163 = arith.muli %145, %162 : vector<1x256xi32>
    %164 = arith.addi %134, %163 : vector<1x256xi32>
    %165 = vector.broadcast %164 : vector<1x256xi32> to vector<256x256xi32>
    %166 = arith.cmpi eq, %52, %165 : vector<256x256xi32>
    %cst_38 = arith.constant 0.000000e+00 : f32
    %167 = vector.shape_cast %161 : vector<1x256xf32> to vector<1x256xf32>
    %168 = vector.broadcast %167 : vector<1x256xf32> to vector<256x256xf32>
    %169 = vector.broadcast %cst_38 : f32 to vector<256x256xf32>
    %170 = arith.select %166, %168, %169 : vector<256x256xi1>, vector<256x256xf32>
    %c0_39 = arith.constant 0 : index
    %c0_40 = arith.constant 0 : index
    %c0_41 = arith.constant 0 : index
    %171 = vector.load %arg3[%c0_39, %c0_40, %c0_41] : memref<1x4x256xf32, #tpu.memory_space<vmem>>, vector<1x4x256xf32>
    %172 = vector.shape_cast %171 : vector<1x4x256xf32> to vector<4x256xf32>
    %c0_42 = arith.constant 0 : index
    %c0_43 = arith.constant 0 : index
    %c0_44 = arith.constant 0 : index
    %173 = vector.load %arg4[%c0_42, %c0_43, %c0_44] : memref<1x1x256xf32, #tpu.memory_space<vmem>>, vector<1x1x256xf32>
    %174 = vector.shape_cast %173 : vector<1x1x256xf32> to vector<1x256xf32>
    %cst_45 = arith.constant dense<0.000000e+00> : vector<4x256xf32>
    %175 = tpu.matmul %172, %123, %cst_45 {dimension_numbers = #tpu.dot_dimension_numbers<[1], [0], [0], [1], [0, 0, 1, 1], [], []>} : vector<4x256xf32>, vector<256x256xf32>, vector<4x256xf32> -> vector<4x256xf32>
    %c0_46 = arith.constant 0 : index
    %c0_47 = arith.constant 0 : index
    %c0_48 = arith.constant 0 : index
    %176 = vector.load %arg5[%c0_46, %c0_47, %c0_48] : memref<1x4x256xf32, #tpu.memory_space<vmem>>, vector<1x4x256xf32>
    %177 = vector.shape_cast %176 : vector<1x4x256xf32> to vector<4x256xf32>
    %178 = vector.shape_cast %175 : vector<4x256xf32> to vector<1x4x256xf32>
    tpu.vector_store %arg5[%c0_46, %c0_47, %c0_48], %178 {strides = array<i32>} : memref<1x4x256xf32, #tpu.memory_space<vmem>>, vector<1x4x256xf32>,
    %cst_49 = arith.constant dense<0.000000e+00> : vector<1x256xf32>
    %179 = tpu.matmul %174, %170, %cst_49 {dimension_numbers = #tpu.dot_dimension_numbers<[1], [0], [0], [1], [0, 0, 1, 1], [], []>} : vector<1x256xf32>, vector<256x256xf32>, vector<1x256xf32> -> vector<1x256xf32>
    %c0_50 = arith.constant 0 : index
    %c0_51 = arith.constant 0 : index
    %c0_52 = arith.constant 0 : index
    %180 = vector.load %arg6[%c0_50, %c0_51, %c0_52] : memref<1x1x256xf32, #tpu.memory_space<vmem>>, vector<1x1x256xf32>
    %181 = vector.shape_cast %180 : vector<1x1x256xf32> to vector<1x256xf32>
    %182 = vector.shape_cast %179 : vector<1x256xf32> to vector<1x1x256xf32>
    tpu.vector_store %arg6[%c0_50, %c0_51, %c0_52], %182 {strides = array<i32>} : memref<1x1x256xf32, #tpu.memory_space<vmem>>, vector<1x1x256xf32>,
    return
  }
  func.func @transform_0(%arg0: i32, %arg1: i32) -> (i32, i32) {
    %c0_i32 = arith.constant 0 : i32
    %c0_i32_0 = arith.constant 0 : i32
    %c0_i32_1 = arith.constant 0 : i32
    return %c0_i32, %c0_i32_0 : i32, i32
  }
  func.func @transform_1(%arg0: i32, %arg1: i32) -> (i32, i32, i32) {
    %c0_i32 = arith.constant 0 : i32
    %c0_i32_0 = arith.constant 0 : i32
    %c0_i32_1 = arith.constant 0 : i32
    return %arg0, %c0_i32, %c0_i32_0 : i32, i32, i32
  }
  func.func @transform_2(%arg0: i32, %arg1: i32) -> (i32, i32, i32) {
    %c0_i32 = arith.constant 0 : i32
    %c0_i32_0 = arith.constant 0 : i32
    %c0_i32_1 = arith.constant 0 : i32
    return %arg0, %c0_i32, %c0_i32_0 : i32, i32, i32
  }
  func.func @transform_3(%arg0: i32, %arg1: i32) -> (i32, i32, i32) {
    %c0_i32 = arith.constant 0 : i32
    %c0_i32_0 = arith.constant 0 : i32
    return %arg0, %c0_i32, %arg1 : i32, i32, i32
  }
  func.func @transform_4(%arg0: i32, %arg1: i32) -> (i32, i32, i32) {
    %c0_i32 = arith.constant 0 : i32
    %c0_i32_0 = arith.constant 0 : i32
    return %arg0, %c0_i32, %arg1 : i32, i32, i32
  }
}

</mosaic_0001>

<bundles_post_ra>
// kernel: tpu_custom_call.1
= control target key start
LH: loop header
LB: loop body
LE: loop exit
PB: predicated region body
PF: predicated region fallthrough
CT: control target
= control target key end

     0   :  { %10 = vsyncpa [#allocation5], 0  ;;  %s3422_s0 = inlined_call_operand.hbm [shape: f32[2,6], index: 0, kind: input, shape index: {}]   ;;  %s3423_s1 = inlined_call_operand.hbm [shape: f32[2,4,256], index: 1, kind: input, shape index: {}]   ;;  %s3424_s2 = inlined_call_operand.vmem [shape: f32[2,1,256], index: 2, kind: input, shape index: {}]   ;;  %s3425_s3 = inlined_call_operand.hbm [shape: f32[2,4,256], index: 3, kind: output, shape index: {0}]   ;;  %s3426_s4 = inlined_call_operand.hbm [shape: f32[2,1,256], index: 4, kind: output, shape index: {1}]  }
   0x1   :  { %11 = vsyncpa [#allocation3], 0 }
   0x2   :  { %13 = vsyncpa [#allocation3 + $0x1], 0 }
   0x3   :  { %14 = vsyncpa [#allocation4], 0 }
   0x4   :  { %16 = vsyncpa [#allocation4 + $0x1], 0 }
   0x5   :  { %17 = vsyncpa [#allocation9], 0 }
   0x6   :  { %19 = vsyncpa [#allocation9 + $0x1], 0  ;;  %s2273_s15 = smov 0   ;;  %s2275_s16 = smov 0  }
   0x7   :  { %s2277_s17 = smov 0   ;;  %s2279_s18 = smov 0  }
   0x8   :  { %s2281_s19 = smov 0   ;;  %s2283_s20 = smov 0  }
   0x9 LB: > { %s1738_s21 = sadd.s32 4294967295, %s2239_s20   ;;  %s1739_s22 = sadd.s32 4294967294, %s2239_s20   ;;  %s2239_s20 = sphi %s2283_s20, %s25_s20   ;;  %s2235_s19 = sphi %s2281_s19, %s3481_s19   ;;  %s2231_s18 = sphi %s2279_s18, %s3480_s18   ;;  %s2227_s17 = sphi %s2277_s17, %s3479_s17   ;;  %s2223_s16 = sphi %s2275_s16, %s3478_s16   ;;  %s2219_s15 = sphi %s2273_s15, %s3477_s15  }
   0xa   : > { %p78_p0 = scmp.ne.s32.totalorder %s2223_s16, %s2219_s15  ;;  %p2307_p1 = scmp.eq.s32.totalorder %s1738_s21, 0 }
   0xb   : > { %p2311_p2 = scmp.eq.s32.totalorder %s1738_s21, 1  ;;  %p136_p3 = scmp.eq.s32.totalorder %s1739_s22, 1 }
   0xc   : > { %s3431_s23 = scalar_select %p2307_p1, 1, 0 }
   0xd   : > { %p2317_p4 = por %p2307_p1, %p78_p0  ;;  %p1740_p5 = scmp.ge.s32.totalorder %s2239_s20, 1 }
   0xe   : > { %p2322_p6 = por %p136_p3, %p78_p0  ;;  %p171_p7 = scmp.lt.s32.totalorder %s2239_s20, 3 }
   0xf   : > { %s3433_s25 = scalar_select %p2317_p4, 1, 0 }
  0x10   : > { %s3434_s26 = scalar_select %p2322_p6, 1, 0 }
  0x11   : > { %p2327_p8 = pnand %p1740_p5, %p171_p7  ;;  %s37_s28 = sadd.s32 1, %s2235_s19 }
  0x12   : > { %p2341_p12 = scmp.ge.s32.totalorder %s37_s28, 2  ;;  %s65_s5 = sadd.s32 1, %s2227_s17 }
  0x13   : > { %p2006_p10 = pneg %p2327_p8  ;;  %p72_p13 = scmp.ne.s32.totalorder %s2227_s17, %s2223_s16 }
  0x14   : > { %p73_p0 = scmp.eq.s32.totalorder %s2239_s20, 0  ;;  %s2078_s8 = scalar_lea.hbm %s3422_s0, 32 }
  0x15   : > { %p2337_p11 = pnand %p2006_p10, %p2307_p1  ;;  %p2079_p3 = scmp.ne.s32.totalorder %s3422_s0, %s2078_s8 }
  0x16   : > { %p2085_p9 = scmp.lt.u32.totalorder %s2078_s8, %s3422_s0 }
  0x17   : > { %p2080_p5 = pneg %p2337_p11 }
  0x19   : > { %p2081_p7 = pnand %p2080_p5, %p2079_p3 }
  0x1b   : > { %p2082_p10 = pneg %p2081_p7 }
  0x1d   : > { %p2087_p6 = pnand %p2085_p9, %p2082_p10 }
  0x1f   : > { %2090 = shalt.err (!%p2087_p6)
}
  0x20   : > { %s2241_s13 = smov [#allocation2]   ;;  %s3483_s28 = smov (%p2341_p12, %s37_s28), 0 }
  0x21   : > { %2009 = dma.hbm_to_smem (!%p2337_p11), %s3422_s0, 32, %s2241_s13, [#allocation5]  }
  0x22   : > { %p2372_p6 = por %p73_p0, %p72_p13  ;;  %p2381_p9 = por %p2311_p2, %p72_p13 }
  0x23   : > { %s62_s6 = ssub.s32 %s2235_s19, %s3483_s28  ;;  %p2022_p3 = scmp.lt.s32.totalorder %s2239_s20, 2 }
  0x24   : > { %s3439_s29 = scalar_select %p2381_p9, 1, 0 }
  0x25   : > { %p63_p5 = scmp.eq.s32.totalorder %s62_s6, 0  ;;  %s193_s7 = sand.u32 1, %s2227_s17  }
  0x26   : > { %s1743_s30 = sshll.u32 %s193_s7, 3  ;;  %s1825_s9 = sshll.u32 %s2235_s19, 7 }
  0x27   : > { %s2390_s8 = scalar_select %p63_p5, %s2227_s17, %s65_s5  }
  0x28   : > { %s2396_s12 = scalar_lea.hbm %s3423_s1, %s1825_s9  ;;  %s197_s24 = scalar_lea.vmem [#allocation6], %s1743_s30 }
  0x29   : > { %s205_s13 = sshll.u32 %s197_s24, 4  ;;  %p2402_p2 = pnand %p2022_p3, %p2372_p6  ;;  %s2398_s13 = int_to_ptr.vmem [resolvable:$true] %s205_s13 }
  0x2a   : > { %s194_s5 = scalar_lea.sflag [#allocation3], %s193_s7  ;;  %s2091_s21 = scalar_lea.hbm %s2396_s12, 128 }
  0x2b   : > { %p2092_p11 = scmp.ne.s32.totalorder %s2396_s12, %s2091_s21  ;;  %p2093_p12 = pneg %p2402_p2 }
  0x2c   : > { %s2096_s9 = scalar_lea.hbm %s3423_s1, 256  ;;  %p2097_p7 = scmp.lt.u32.totalorder %s2396_s12, %s3423_s1 }
  0x2d   : > { %p2094_p13 = pnand %p2093_p12, %p2092_p11  ;;  %p2098_p10 = scmp.lt.u32.totalorder %s2096_s9, %s2091_s21 }
  0x2e   : > { %p2100_p3 = scmp.lt.u32.totalorder %s2091_s21, %s2396_s12 }
  0x2f   : > { %p2095_p0 = pneg %p2094_p13  ;;  %p2099_p6 = por %p2098_p10, %p2097_p7 }
  0x31   : > { %p2101_p5 = por %p2100_p3, %p2099_p6 }
  0x33   : > { %p2102_p9 = pnand %p2101_p5, %p2095_p0 }
  0x35   : > { %2105 = shalt.err (!%p2102_p9)
}
  0x36   : > { %s2106_s7 = scalar_lea.vmem %s2398_s13, 128  ;;  %s2242_s11 = smov [#allocation6]  }
  0x37   : > { %p2107_p11 = scmp.ne.s32.totalorder %s2398_s13, %s2106_s7  ;;  %s2111_s24 = sshll.u32 %s2242_s11, 4  ;;  %s2112_s24 = int_to_ptr.vmem [resolvable:$false] %s2111_s24 }
  0x38   : > { %s2113_s6 = scalar_lea.vmem %s2112_s24, 256  ;;  %p2114_p1 = scmp.lt.s32.totalorder %s2398_s13, %s2112_s24 }
  0x39   : > { %p2109_p13 = pnand %p2107_p11, %p2093_p12  ;;  %p2115_p7 = scmp.lt.s32.totalorder %s2113_s6, %s2106_s7 }
  0x3b   : > { %p2110_p4 = pneg %p2109_p13  ;;  %p2116_p10 = por %p2115_p7, %p2114_p1 }
  0x3d   : > { %p2117_p6 = pnand %p2116_p10, %p2110_p4 }
  0x3f   : > { %2120 = shalt.err (!%p2117_p6)
}
  0x40   : > { %2013 = dma.hbm_to_vmem [thread:$0]  (!%p2402_p2), %s2396_s12, 128, %s2398_s13, %s194_s5  }
  0x41   : > { %221 = sbr.rel (%p2327_p8) target bundleno = 601 (0x259), region = 32  ;;  %p3441_p9 = scmp.ne.s32.totalorder (!%p2327_p8), %s3431_s23, 0 }
  0x48   : > { %2202 = dma.done.wait (%p3441_p9), [#allocation5], 32  }
  0x49   : > { %2204 = vsyncadd (%p3441_p9), [#allocation5], 4294967264  ;;  %s2438_s21 = sand.u32 1, %s2223_s16   ;;  %p3442_p1 = scmp.ne.s32.totalorder %s3433_s25, 0 }
  0x4a   : > { %s1748_s14 = sshll.u32 %s2438_s21, 3  ;;  %s228_s30 = scalar_lea.sflag [#allocation3], %s2438_s21 }
  0x4b   : > { %s2444_s12 = scalar_lea.vmem [#allocation6], %s1748_s14 }
  0x4c   : > { %2206 = dma.done.wait (%p3442_p1), %s228_s30, 128  }
  0x4d   : > { %2208 = vsyncadd (%p3442_p1), %s228_s30, 4294967168 }
  0x4e   : > { %236 = sfence }
  0x4f   : > { %v272_v0 = vlaneseq  ;;  %s2451_s23 = sshll.u32 %s2231_s18, 7  ;;  %p266_p4 = scmp.lt.s32.totalorder %s2231_s18, 1 }
  0x50   : > { %s326_s27 = sadd.s32 1, %s2451_s23  ;;  %s330_s5 = sadd.s32 3, %s2451_s23 }
  0x51   : > { %v307_v1 = vand.u32 127, %v272_v0  ;;  %s327_s13 = sld [smem:[#allocation2 + %s326_s27]]  ;;  %s332_s25 = sadd.s32 4, %s2451_s23  ;;  %v2471_v20 = vshrl.u32 %v272_v0, 7 }
  0x52   : > { %s2457_s9 = sld [smem:[#allocation2 + %s2451_s23]]  ;;  %s328_s7 = sadd.s32 2, %s2451_s23 }
  0x53   : > { %v308_v2 = vadd.s32 128, %v307_v1  ;;  %v312_v3 = vcvt.s32.f32 %v307_v1  ;;  %s2460_s22 = sld [smem:[#allocation2 + %s330_s5]]  ;;  %s334_s11 = sadd.s32 5, %s2451_s23  ;;  %v2476_v32 = vadd.s32 8, %v2471_v20  ;;  %v2479_v37 = vadd.s32 16, %v2471_v20 }
  0x54   : > { %s333_s10 = sld [smem:[#allocation2 + %s332_s25]]  ;;  %v2482_v38 = vadd.s32 24, %v2471_v20  ;;  %v2485_v39 = vadd.s32 32, %v2471_v20  ;;  %v2488_v40 = vadd.s32 40, %v2471_v20  ;;  %v2491_v45 = vadd.s32 48, %v2471_v20  ;;  %s1827_s25 = sshll.u32 %s2231_s18, 5 }
  0x55   : > { %v313_v4 = vcvt.s32.f32 %v308_v2  ;;  %v314_v5 = vadd.f32 0.5, %v312_v3  ;;  %s2464_s24 = sld [smem:[#allocation2 + %s328_s7]]  ;;  %v2494_v46 = vadd.s32 56, %v2471_v20  ;;  %v2497_v47 = vadd.s32 64, %v2471_v20  ;;  %p3474_p2 = scmp.ne.s32.totalorder %s3439_s29, 0 }
  0x56   : > { %s2466_s6 = sld [smem:[#allocation2 + %s334_s11]]  ;;  %v2500_v48 = vadd.s32 72, %v2471_v20  ;;  %v2503_v51 = vadd.s32 80, %v2471_v20  ;;  %v2506_v52 = vadd.s32 88, %v2471_v20  ;;  %v2509_v55 = vadd.s32 96, %v2471_v20 }
  0x57   : > { %v315_v6 = vadd.f32 0.5, %v313_v4  ;;  %v316_v7 = vmul.f32 0.0625, %v314_v5  ;;  %v339_v10 = vstv %s327_s13  ;;  %v2512_v56 = vadd.s32 104, %v2471_v20  ;;  %s3275_s30 = scalar_select %p266_p4, %s2231_s18, 1 }
  0x58   : > { %v336_v14 = vstv %s2457_s9  ;;  %v2517_v60 = vadd.s32 112, %v2471_v20  ;;  %v2520_v62 = vadd.s32 120, %v2471_v20  ;;  %v2523_v63 = vadd.s32 128, %v2471_v20  ;;  %s1750_s9 = sshll.u32 %s2438_s21, 1  ;;  %s2246_s18 = smov [#allocation8]  }
  0x59   : > { %v317_v8 = vmul.f32 0.0625, %v315_v6  ;;  %v318_v9 = vfloor.f32 %v316_v7  ;;  %v347_v15 = vstv %s2460_s22  ;;  %v2526_v1 = vadd.s32 136, %v2471_v20  ;;  %s1751_s27 = sshll.u32 %s3275_s30, 1  ;;  %s265_s22 = scalar_lea.vmem [#allocation8], %s1750_s9 }
  0x5a   : > { %v350_v11 = vstv %s333_s10  ;;  %s269_s5 = scalar_lea.vmem %s3424_s2, %s1751_s27  ;;  %s1598_s10 = sshll.u32 %s265_s22, 4  ;;  %s3343_s10 = int_to_ptr.vmem [resolvable:$true] %s1598_s10 }
  0x5b   : > { %v319_v12 = vfloor.f32 %v317_v8  ;;  %v320_v13 = vmul.f32 16.0, %v318_v9  ;;  %v340_v18 = vmul.f32 %v339_v10, %v318_v9  ;;  %v351_v19 = vmul.f32 %v350_v11, %v318_v9  ;;  %s2121_s30 = scalar_lea.vmem %s3343_s10, 32  ;;  %s2125_s27 = sshll.u32 %s2246_s18, 4  ;;  %s2126_s27 = int_to_ptr.vmem [resolvable:$false] %s2125_s27 }
  0x5c   : > { %v344_v26 = vstv %s2464_s24  ;;  %v355_v27 = vstv %s2466_s6  ;;  %s3341_s24 = scalar_lea.hbm %s3426_s4, %s1827_s25  ;;  %s1566_s6 = scalar_lea.sflag [#allocation9], %s2438_s21 }
  0x5d   : > { %v321_v16 = vmul.f32 16.0, %v319_v12  ;;  %v322_v17 = vsub.f32 %v312_v3, %v320_v13  ;;  %v341_v21 = vmul.f32 %v339_v10, %v319_v12  ;;  %v352_v23 = vmul.f32 %v350_v11, %v319_v12  ;;  %p2122_p8 = scmp.ne.s32.totalorder %s3343_s10, %s2121_s30  ;;  %p2128_p3 = scmp.lt.s32.totalorder %s3343_s10, %s2126_s27 }
  0x5f   : > { %v323_v22 = vsub.f32 %v313_v4, %v321_v16  ;;  %v337_v24 = vmul.f32 %v336_v14, %v322_v17  ;;  %v348_v25 = vmul.f32 %v347_v15, %v322_v17  ;;  %p2123_p12 = pnand %p2122_p8, %p3474_p2 }
  0x61   : > { %v338_v28 = vmul.f32 %v336_v14, %v323_v22  ;;  %v349_v29 = vmul.f32 %v347_v15, %v323_v22  ;;  %v342_v30 = vadd.f32 %v340_v18, %v337_v24  ;;  %v353_v31 = vadd.f32 %v351_v19, %v348_v25  ;;  %p2124_p0 = pneg %p2123_p12 }
  0x63   : > { %v343_v33 = vadd.f32 %v341_v21, %v338_v28  ;;  %v354_v34 = vadd.f32 %v352_v23, %v349_v29  ;;  %v345_v35 = vadd.f32 %v344_v26, %v342_v30  ;;  %v356_v36 = vadd.f32 %v355_v27, %v353_v31 }
  0x65   : > { %v346_v41 = vadd.f32 %v344_v26, %v343_v33  ;;  %v357_v42 = vadd.f32 %v355_v27, %v354_v34  ;;  %v358_v43 = vfloor.f32 %v345_v35  ;;  %v360_v44 = vfloor.f32 %v356_v36 }
  0x67   : > { %v359_v49 = vfloor.f32 %v346_v41  ;;  %v361_v50 = vfloor.f32 %v357_v42  ;;  %v1988_v53 = vtrunc.f32 %v358_v43  ;;  %v1992_v54 = vtrunc.f32 %v360_v44 }
  0x68   : > { %v2532_v4 = vsub.f32 %v345_v35, %v358_v43  ;;  %v2534_v5 = vsub.f32 %v356_v36, %v360_v44  ;;  %v2243_v43 = vmov 0  }
  0x69   : > { %v2514_v57 = vsub.f32 %v357_v42, %v361_v50  ;;  %v1990_v58 = vtrunc.f32 %v359_v49  ;;  %v1994_v59 = vtrunc.f32 %v361_v50  ;;  %v363_v61 = vsub.f32 %v346_v41, %v359_v49 }
  0x6a   : > { %v2537_v8 = vcvt.f32.s32 %v1988_v53  ;;  %v2539_v9 = vcvt.f32.s32 %v1992_v54  ;;  %v464_v14 = vsub.f32 1.0, %v2532_v4  ;;  %v466_v15 = vsub.f32 1.0, %v2534_v5 }
  0x6b   : > { %v2528_v2 = vcvt.f32.s32 %v1990_v58  ;;  %v2530_v3 = vcvt.f32.s32 %v1994_v59  ;;  %v465_v6 = vsub.f32 1.0, %v363_v61  ;;  %v467_v7 = vsub.f32 1.0, %v2514_v57 }
  0x6c   : > { %v487_v18 = vmul.f32 %v2514_v57, %v363_v61  ;;  %vm1195_vm12 = vcmp.gt.f32.partialorder %v363_v61, 0.5  ;;  %vm1197_vm13 = vcmp.eq.f32.partialorder %v363_v61, 0.5  ;;  %v370_v24 = vmul.u32 16, %v2539_v9 }
  0x6d   : > { %v371_v10 = vmul.u32 16, %v2530_v3  ;;  %vm439_vm0 = vcmp.ge.s32.totalorder %v2528_v2, 0  ;;  %vm441_vm1 = vcmp.lt.s32.totalorder %v2528_v2, 16  ;;  %vm445_vm2 = vcmp.ge.s32.totalorder %v2528_v2, 4294967295 }
  0x6e   : > { %vm2545_vm3 = vmand %vm439_vm0, %vm441_vm1  ;;  %vm447_vm4 = vcmp.lt.s32.totalorder %v2528_v2, 15  ;;  %vm451_vm5 = vcmp.ge.s32.totalorder %v2530_v3, 0  ;;  %vm453_vm6 = vcmp.lt.s32.totalorder %v2530_v3, 16  ;;  %vm457_vm7 = vcmp.ge.s32.totalorder %v2530_v3, 4294967295 }
  0x6f   : > { %v2554_v12 = vadd.s32 %v2528_v2, %v371_v10  ;;  %vm2556_vm8 = vmand %vm445_vm2, %vm447_vm4  ;;  %vm459_vm9 = vcmp.lt.s32.totalorder %v2530_v3, 15  ;;  %v469_v17 = vmul.f32 %v467_v7, %v465_v6  ;;  %v1199_v19 = vand.u32 1, %v2528_v2 }
  0x70   : > { %vm2563_vm10 = vmand %vm451_vm5, %vm453_vm6  ;;  %v1213_v21 = vand.u32 1, %v2530_v3  ;;  %v475_v23 = vmul.f32 %v467_v7, %v363_v61  ;;  %v481_v26 = vmul.f32 %v465_v6, %v2514_v57  ;;  %vm1211_vm0 = vcmp.eq.f32.partialorder %v2514_v57, 0.5 }
  0x71   : > { %vm2570_vm11 = vmand %vm457_vm7, %vm459_vm9  ;;  %v2577_v25 = vsub.s32 %v2471_v20, %v2554_v12  ;;  %v2588_v27 = vsub.s32 %v2476_v32, %v2554_v12  ;;  %vm1201_vm2 = vcmp.eq.s32.totalorder %v1199_v19, 1  ;;  %v2595_v28 = vadd.s32 %v2537_v8, %v370_v24 }
  0x72   : > { %vm463_vm14 = vmand %vm2545_vm3, %vm2563_vm10  ;;  %vm2604_vm6 = vcmp.eq.s32.totalorder %v1213_v21, 1  ;;  %vm440_vm7 = vcmp.lt.s32.totalorder %v2537_v8, 16  ;;  %vm450_vm4 = vcmp.ge.s32.totalorder %v2539_v9, 0  ;;  %v2635_v41 = vmul.f32 %v466_v15, %v464_v14 }
  0x73   : > { %vm473_vm1 = vmand %vm2556_vm8, %vm2563_vm10  ;;  %v2598_v29 = vsel %vm463_vm14, %v469_v17, 0.0  ;;  %vm446_vm14 = vcmp.lt.s32.totalorder %v2537_v8, 15  ;;  %v2624_v34 = vsub.s32 %v2471_v20, %v2595_v28  ;;  %v2633_v36 = vsub.s32 %v2476_v32, %v2595_v28 }
  0x74   : > { %vm479_vm5 = vmand %vm2545_vm3, %vm2570_vm11  ;;  %v2610_v31 = vsel %vm473_vm1, %v475_v23, 0.0  ;;  %vm452_vm3 = vcmp.lt.s32.totalorder %v2539_v9, 16  ;;  %v1198_v42 = vand.u32 1, %v2537_v8  ;;  %v2644_v49 = vmul.f32 %v466_v15, %v2532_v4 }
  0x75   : > { %vm485_vm10 = vmand %vm2556_vm8, %vm2570_vm11  ;;  %v2619_v33 = vsel %vm479_vm5, %v481_v26, 0.0  ;;  %v2647_v50 = vmul.f32 %v464_v14, %v2534_v5  ;;  %v2655_v53 = vmul.f32 %v2534_v5, %v2532_v4  ;;  %v1212_v54 = vand.u32 1, %v2539_v9 }
  0x76   : > { %vm1203_vm15 = vmand %vm1197_vm13, %vm1201_vm2  ;;  %v2628_v35 = vsel %vm485_vm10, %v487_v18, 0.0  ;;  %vm3453_vm13 = vcmp.gt.f32.partialorder %v2514_v57, 0.5  ;;  %vm3454_vm2 = vcmp.ge.s32.totalorder %v2537_v8, 0  ;;  %vm811_vm1 = vcmp.eq.s32.totalorder %v2577_v25, 16 }
  0x77   : > { %vm1205_vm8 = vmor %vm1195_vm12, %vm1203_vm15  ;;  %vm491_vm12 = vcmp.eq.s32.totalorder %v2577_v25, 0  ;;  %v3464_v14 = vmov 0  ;;  %v875_v18 = vsel %vm811_vm1, %v2619_v33, 0.0  ;;  %v2244_v21 = vmov 0.0  }
  0x78   : > { %v1207_v44 = vsel %vm1205_vm8, 1, %v2243_v43  ;;  %vm1217_vm11 = vmand %vm1211_vm0, %vm2604_vm6  ;;  %vm493_vm0 = vcmp.eq.s32.totalorder %v2588_v27, 0  ;;  %v555_v57 = vsel %vm491_vm12, %v2598_v29, 0.0  ;;  %vm619_vm6 = vcmp.eq.s32.totalorder %v2577_v25, 1 }
  0x79   : > { %vm1219_vm15 = vmor %vm3453_vm13, %vm1217_vm11  ;;  %v1223_v32 = vadd.s32 %v2528_v2, %v1207_v44  ;;  %v557_v61 = vsel %vm493_vm0, %v2598_v29, 0.0  ;;  %vm3457_vm11 = vcmp.ge.s32.totalorder %v2537_v8, 4294967295  ;;  %vm2681_vm12 = vcmp.eq.s32.totalorder %v1198_v42, 1 }
  0x7a   : > { %v1221_v58 = vsel %vm1219_vm15, 1, %v2243_v43  ;;  %vm2664_vm5 = vmand %vm3454_vm2, %vm440_vm7  ;;  %vm621_vm2 = vcmp.eq.s32.totalorder %v2588_v27, 1  ;;  %vm1208_vm0 = vcmp.gt.f32.partialorder %v2534_v5, 0.5  ;;  %vm3467_vm1 = vcmp.ge.s32.totalorder %v2539_v9, 4294967295 }
  0x7b   : > { %v1225_v2 = vadd.s32 %v2530_v3, %v1221_v58  ;;  %vm1227_vm10 = vcmp.ge.s32.totalorder %v1223_v32, 0  ;;  %vm1229_vm8 = vcmp.lt.s32.totalorder %v1223_v32, 16  ;;  %v1243_v6 = vmul.u32 16, %v1221_v58  ;;  %vm2676_vm13 = vmand %vm3457_vm11, %vm446_vm14 }
  0x7c   : > { %vm1231_vm15 = vmand %vm1227_vm10, %vm1229_vm8  ;;  %v683_v3 = vsel %vm619_vm6, %v2610_v31, 0.0  ;;  %vm813_vm14 = vcmp.eq.s32.totalorder %v2588_v27, 16  ;;  %vm2701_vm8 = vcmp.eq.s32.totalorder %v1212_v54, 1  ;;  %v685_v15 = vsel %vm621_vm2, %v2610_v31, 0.0 }
  0x7d   : > { %vm1233_vm11 = vcmp.ge.s32.totalorder %v1225_v2, 0  ;;  %vm1237_vm9 = vcmp.lt.s32.totalorder %v1225_v2, 16  ;;  %v2690_v11 = vadd.s32 %v1243_v6, %v1207_v44  ;;  %vm2696_vm7 = vmand %vm450_vm4, %vm452_vm3  ;;  %v3465_v14 = vsel %vm2701_vm8, 4294967295, %v3464_v14 }
  0x7e   : > { %vm1235_vm6 = vmand %vm1231_vm15, %vm1233_vm11  ;;  %v747_v16 = vadd.f32 %v683_v3, %v555_v57  ;;  %v749_v17 = vadd.f32 %v685_v15, %v557_v61  ;;  %v877_v19 = vsel %vm813_vm14, %v2619_v33, 0.0  ;;  %vm1003_vm8 = vcmp.eq.s32.totalorder %v2577_v25, 17 }
  0x7f   : > { %vm1239_vm4 = vmand %vm1235_vm6, %vm1237_vm9  ;;  %vm1247_vm3 = vcmp.eq.s32.totalorder %v2577_v25, %v2690_v11  ;;  %vm1249_vm10 = vcmp.eq.s32.totalorder %v2588_v27, %v2690_v11  ;;  %vm1005_vm2 = vcmp.eq.s32.totalorder %v2588_v27, 17  ;;  %v1067_v26 = vsel %vm1003_vm8, %v2628_v35, 0.0 }
  0x80   : > { %v1241_v22 = vsel %vm1239_vm4, 1.0, %v2244_v21  ;;  %vm1893_vm15 = vmpackc.low %vm1249_vm10, %vm1247_vm3  ;;  %v939_v23 = vadd.f32 %v875_v18, %v747_v16  ;;  %v941_v24 = vadd.f32 %v877_v19, %v749_v17  ;;  %vm3466_vm9 = vcmp.lt.s32.totalorder %v2539_v9, 15 }
  0x81   : > { %v2717_v30 = vpack.c.bf16 %v1241_v22, %v1241_v22  ;;  %vm2723_vm14 = vmand %vm3467_vm1, %vm3466_vm9  ;;  %v1069_v25 = vsel %vm1005_vm2, %v2628_v35, 0.0  ;;  %vm490_vm11 = vcmp.eq.s32.totalorder %v2624_v34, 0  ;;  %vm492_vm10 = vcmp.eq.s32.totalorder %v2633_v36, 0 }
  0x82   : > { %vm462_vm8 = vmand %vm2664_vm5, %vm2696_vm7  ;;  %v1131_v27 = vadd.f32 %v1067_v26, %v939_v23  ;;  %v1133_v44 = vadd.f32 %v1069_v25, %v941_v24  ;;  %vm618_vm6 = vcmp.eq.s32.totalorder %v2624_v34, 1  ;;  %vm620_vm4 = vcmp.eq.s32.totalorder %v2633_v36, 1 }
  0x83   : > { %1894 = vmatprep.subr.msk.bf16.mxu1 %vm1893_vm15, %v2717_v30  ;;  %v2738_v32 = vsel %vm462_vm8, %v2635_v41, 0.0  ;;  %vm472_vm3 = vmand %vm2676_vm13, %vm2696_vm7  ;;  %vm810_vm2 = vcmp.eq.s32.totalorder %v2624_v34, 16  ;;  %vm812_vm9 = vcmp.eq.s32.totalorder %v2633_v36, 16  ;;  %vm1002_vm1 = vcmp.eq.s32.totalorder %v2624_v34, 17 }
  0x84   : > { %v2748_v54 = vsel %vm472_vm3, %v2644_v49, 0.0  ;;  %vm478_vm15 = vmand %vm2664_vm5, %vm2723_vm14  ;;  %v1828_v41 = vpack.c.bf16 %v1133_v44, %v1131_v27  ;;  %v554_v58 = vsel %vm490_vm11, %v2738_v32, 0.0  ;;  %v556_v57 = vsel %vm492_vm10, %v2738_v32, 0.0 }
  0x85   : > { %v2761_v61 = vsel %vm478_vm15, %v2647_v50, 0.0  ;;  %vm484_vm7 = vmand %vm2676_vm13, %vm2723_vm14  ;;  %v682_v49 = vsel %vm618_vm6, %v2748_v54, 0.0  ;;  %v684_v59 = vsel %vm620_vm4, %v2748_v54, 0.0  ;;  %vm1004_vm5 = vcmp.eq.s32.totalorder %v2633_v36, 17 }
  0x86   : > { %v2773_v2 = vsel %vm484_vm7, %v2655_v53, 0.0  ;;  %vm3470_vm11 = vcmp.eq.f32.partialorder %v2532_v4, 0.5  ;;  %1829 = vmatprep.subr.bf16.mxu0 %v1828_v41  ;;  %v746_v50 = vadd.f32 %v682_v49, %v554_v58  ;;  %v748_v6 = vadd.f32 %v684_v59, %v556_v57 }
  0x87   : > { %vm1202_vm10 = vmand %vm3470_vm11, %vm2681_vm12  ;;  %v874_v7 = vsel %vm810_vm2, %v2761_v61, 0.0  ;;  %vm3471_vm13 = vcmp.gt.f32.partialorder %v2532_v4, 0.5  ;;  %v876_v53 = vsel %vm812_vm9, %v2761_v61, 0.0  ;;  %v1066_v10 = vsel %vm1002_vm1, %v2773_v2, 0.0 }
  0x88   : > { %vm1204_vm14 = vmor %vm3471_vm13, %vm1202_vm10  ;;  %v1068_v3 = vsel %vm1004_vm5, %v2773_v2, 0.0  ;;  %v379_v13 = vsub.s32 %v2479_v37, %v2554_v12  ;;  %vm3472_vm12 = vnez %v3465_v14  ;;  %vm3473_vm8 = vcmp.eq.f32.partialorder %v2534_v5, 0.5 }
  0x89   : > { %v1206_v15 = vsel %vm1204_vm14, 1, %v2243_v43  ;;  %vm1216_vm6 = vmand %vm3473_vm8, %vm3472_vm12  ;;  %v938_v4 = vadd.f32 %v874_v7, %v746_v50  ;;  %v940_v16 = vadd.f32 %v876_v53, %v748_v6  ;;  %v381_v17 = vsub.s32 %v2482_v38, %v2554_v12 }
  0x8a   : > { %vm1218_vm4 = vmor %vm1208_vm0, %vm1216_vm6  ;;  %v1222_v18 = vadd.s32 %v2537_v8, %v1206_v15  ;;  %vm1251_vm3 = vcmp.eq.s32.totalorder %v379_v13, %v2690_v11  ;;  %v2806_v19 = vsub.s32 %v2479_v37, %v2595_v28  ;;  %v2810_v14 = vsub.s32 %v2482_v38, %v2595_v28 }
  0x8b   : > { %v1220_v22 = vsel %vm1218_vm4, 1, %v2243_v43  ;;  %v1130_v23 = vadd.f32 %v1066_v10, %v938_v4  ;;  %v1132_v24 = vadd.f32 %v1068_v3, %v940_v16  ;;  %vm1253_vm2 = vcmp.eq.s32.totalorder %v381_v17, %v2690_v11 }
  0x8c   : > { %v1224_v5 = vadd.s32 %v2539_v9, %v1220_v22  ;;  %vm1226_vm0 = vcmp.ge.s32.totalorder %v1222_v18, 0  ;;  %vm1228_vm9 = vcmp.lt.s32.totalorder %v1222_v18, 16  ;;  %v1242_v8 = vmul.u32 16, %v1220_v22 }
  0x8d   : > { %vm1230_vm1 = vmand %vm1226_vm0, %vm1228_vm9  ;;  %v1830_v26 = vpack.c.bf16 %v1132_v24, %v1130_v23  ;;  %vm495_vm15 = vcmp.eq.s32.totalorder %v379_v13, 0  ;;  %vm497_vm7 = vcmp.eq.s32.totalorder %v381_v17, 0  ;;  %vm623_vm5 = vcmp.eq.s32.totalorder %v379_v13, 1 }
  0x8e   : > { %vm1232_vm11 = vcmp.ge.s32.totalorder %v1224_v5, 0  ;;  %vm1236_vm10 = vcmp.lt.s32.totalorder %v1224_v5, 16  ;;  %v2815_v37 = vadd.s32 %v1242_v8, %v1206_v15  ;;  %v559_v38 = vsel %vm495_vm15, %v2598_v29, 0.0 }
  0x8f   : > { %vm1234_vm13 = vmand %vm1230_vm1, %vm1232_vm11  ;;  %1831 = vmatpush1.bf16.msra.mxu0 %v1830_v26  ;;  %v561_v43 = vsel %vm497_vm7, %v2598_v29, 0.0  ;;  %vm625_vm14 = vcmp.eq.s32.totalorder %v381_v17, 1  ;;  %v687_v9 = vsel %vm623_vm5, %v2610_v31, 0.0  ;;  %vm815_vm12 = vcmp.eq.s32.totalorder %v379_v13, 16 }
  0x90   : > { %vm1238_vm8 = vmand %vm1234_vm13, %vm1236_vm10  ;;  %vm1246_vm6 = vcmp.eq.s32.totalorder %v2624_v34, %v2815_v37  ;;  %vm1248_vm4 = vcmp.eq.s32.totalorder %v2633_v36, %v2815_v37  ;;  %vm1250_vm0 = vcmp.eq.s32.totalorder %v2806_v19, %v2815_v37  ;;  %vm1252_vm9 = vcmp.eq.s32.totalorder %v2810_v14, %v2815_v37 }
  0x91   : > { %v1240_v42 = vsel %vm1238_vm8, 1.0, %v2244_v21  ;;  %vm1896_vm1 = vmpackc.low %vm1248_vm4, %vm1246_vm6  ;;  %v689_v25 = vsel %vm625_vm14, %v2610_v31, 0.0  ;;  %v751_v27 = vadd.f32 %v687_v9, %v559_v38  ;;  %vm817_vm15 = vcmp.eq.s32.totalorder %v381_v17, 16 }
  0x92   : > { %v2830_v44 = vpack.c.bf16 %v1240_v42, %v1240_v42  ;;  %vm1899_vm7 = vmpackc.low %vm1253_vm2, %vm1251_vm3  ;;  %v753_v34 = vadd.f32 %v689_v25, %v561_v43  ;;  %v879_v36 = vsel %vm815_vm12, %v2619_v33, 0.0  ;;  %v881_v41 = vsel %vm817_vm15, %v2619_v33, 0.0 }
  0x93   : > { %v943_v58 = vadd.f32 %v879_v36, %v751_v27  ;;  %vm1007_vm5 = vcmp.eq.s32.totalorder %v379_v13, 17  ;;  %vm1009_vm11 = vcmp.eq.s32.totalorder %v381_v17, 17  ;;  %vm494_vm10 = vcmp.eq.s32.totalorder %v2806_v19, 0  ;;  %vm1902_vm3 = vmpackc.low %vm1252_vm9, %vm1250_vm0 }
  0x94   : > { %1897 = vmatpush1.bf16.msk.msra.mxu1 %vm1896_vm1, %v2830_v44  ;;  %v945_v21 = vadd.f32 %v881_v41, %v753_v34  ;;  %v1071_v57 = vsel %vm1007_vm5, %v2628_v35, 0.0  ;;  %v1073_v49 = vsel %vm1009_vm11, %v2628_v35, 0.0  ;;  %vm496_vm13 = vcmp.eq.s32.totalorder %v2810_v14, 0 }
  0x95   : > { %1900 = vmatprep.subr.msk.bf16.mxu1 %vm1899_vm7, %v2717_v30  ;;  %v1135_v59 = vadd.f32 %v1071_v57, %v943_v58  ;;  %v558_v50 = vsel %vm494_vm10, %v2738_v32, 0.0  ;;  %v560_v6 = vsel %vm496_vm13, %v2738_v32, 0.0  ;;  %vm622_vm2 = vcmp.eq.s32.totalorder %v2806_v19, 1 }
  0x96   : > { %v1137_v7 = vadd.f32 %v1073_v49, %v945_v21  ;;  %vm624_vm14 = vcmp.eq.s32.totalorder %v2810_v14, 1  ;;  %v686_v53 = vsel %vm622_vm2, %v2748_v54, 0.0  ;;  %vm814_vm12 = vcmp.eq.s32.totalorder %v2806_v19, 16 }
  0x97   : > { %v688_v10 = vsel %vm624_vm14, %v2748_v54, 0.0  ;;  %v750_v3 = vadd.f32 %v686_v53, %v558_v50  ;;  %vm816_vm8 = vcmp.eq.s32.totalorder %v2810_v14, 16  ;;  %v878_v13 = vsel %vm814_vm12, %v2761_v61, 0.0 }
  0x98   : > { %1903 = vmatpush1.bf16.msk.msra.mxu1 %vm1902_vm3, %v2830_v44  ;;  %v1832_v15 = vpack.c.bf16 %v1137_v7, %v1135_v59  ;;  %v752_v4 = vadd.f32 %v688_v10, %v560_v6  ;;  %v880_v16 = vsel %vm816_vm8, %v2761_v61, 0.0  ;;  %vm1006_vm6 = vcmp.eq.s32.totalorder %v2806_v19, 17 }
  0x99   : > { %v942_v17 = vadd.f32 %v878_v13, %v750_v3  ;;  %vm1008_vm4 = vcmp.eq.s32.totalorder %v2810_v14, 17  ;;  %v1070_v18 = vsel %vm1006_vm6, %v2773_v2, 0.0  ;;  %v383_v22 = vsub.s32 %v2485_v39, %v2554_v12 }
  0x9a   : > { %1833 = vmatprep.subr.bf16.mxu0 %v1832_v15  ;;  %v944_v23 = vadd.f32 %v880_v16, %v752_v4  ;;  %v1072_v24 = vsel %vm1008_vm4, %v2773_v2, 0.0  ;;  %v385_v5 = vsub.s32 %v2488_v40, %v2554_v12  ;;  %v382_v8 = vsub.s32 %v2485_v39, %v2595_v28 }
  0x9b   : > { %v1134_v26 = vadd.f32 %v1070_v18, %v942_v17  ;;  %vm1255_vm0 = vcmp.eq.s32.totalorder %v383_v22, %v2690_v11  ;;  %v384_v19 = vsub.s32 %v2488_v40, %v2595_v28  ;;  %vm499_vm9 = vcmp.eq.s32.totalorder %v383_v22, 0 }
  0x9c   : > { %v1136_v14 = vadd.f32 %v1072_v24, %v944_v23  ;;  %vm1257_vm1 = vcmp.eq.s32.totalorder %v385_v5, %v2690_v11  ;;  %vm1254_vm15 = vcmp.eq.s32.totalorder %v382_v8, %v2815_v37  ;;  %vm501_vm7 = vcmp.eq.s32.totalorder %v385_v5, 0 }
  0x9d   : > { %vm1905_vm5 = vmpackc.low %vm1257_vm1, %vm1255_vm0  ;;  %vm1256_vm11 = vcmp.eq.s32.totalorder %v384_v19, %v2815_v37  ;;  %v563_v38 = vsel %vm499_vm9, %v2598_v29, 0.0  ;;  %v565_v39 = vsel %vm501_vm7, %v2598_v29, 0.0  ;;  %vm627_vm10 = vcmp.eq.s32.totalorder %v383_v22, 1 }
  0x9e   : > { %v1834_v43 = vpack.c.bf16 %v1136_v14, %v1134_v26  ;;  %1906 = vmatprep.subr.msk.bf16.mxu1 %vm1905_vm5, %v2717_v30  ;;  %vm1908_vm13 = vmpackc.low %vm1256_vm11, %vm1254_vm15  ;;  %vm629_vm3 = vcmp.eq.s32.totalorder %v385_v5, 1  ;;  %v691_v40 = vsel %vm627_vm10, %v2610_v31, 0.0  ;;  %vm819_vm2 = vcmp.eq.s32.totalorder %v383_v22, 16 }
  0x9f   : > { %1909 = vmatpush1.bf16.msk.msra.mxu1 %vm1908_vm13, %v2830_v44  ;;  %v693_v9 = vsel %vm629_vm3, %v2610_v31, 0.0  ;;  %v755_v42 = vadd.f32 %v691_v40, %v563_v38  ;;  %vm821_vm14 = vcmp.eq.s32.totalorder %v385_v5, 16  ;;  %v883_v25 = vsel %vm819_vm2, %v2619_v33, 0.0 }
  0xa0   : > { %1835 = vmatpush1.bf16.msra.mxu0 %v1834_v43  ;;  %v757_v27 = vadd.f32 %v693_v9, %v565_v39  ;;  %v885_v34 = vsel %vm821_vm14, %v2619_v33, 0.0  ;;  %vm1011_vm12 = vcmp.eq.s32.totalorder %v383_v22, 17  ;;  %vm1013_vm8 = vcmp.eq.s32.totalorder %v385_v5, 17 }
  0xa1   : > { %v947_v36 = vadd.f32 %v883_v25, %v755_v42  ;;  %v1075_v41 = vsel %vm1011_vm12, %v2628_v35, 0.0  ;;  %v1077_v58 = vsel %vm1013_vm8, %v2628_v35, 0.0  ;;  %vm498_vm6 = vcmp.eq.s32.totalorder %v382_v8, 0 }
  0xa2   : > { %v949_v21 = vadd.f32 %v885_v34, %v757_v27  ;;  %vm500_vm4 = vcmp.eq.s32.totalorder %v384_v19, 0  ;;  %v562_v57 = vsel %vm498_vm6, %v2738_v32, 0.0  ;;  %vm626_vm0 = vcmp.eq.s32.totalorder %v382_v8, 1 }
  0xa3   : > { %v1139_v49 = vadd.f32 %v1075_v41, %v947_v36  ;;  %v564_v59 = vsel %vm500_vm4, %v2738_v32, 0.0  ;;  %vm628_vm9 = vcmp.eq.s32.totalorder %v384_v19, 1  ;;  %v690_v50 = vsel %vm626_vm0, %v2748_v54, 0.0 }
  0xa4   : > { %v1141_v6 = vadd.f32 %v1077_v58, %v949_v21  ;;  %v692_v7 = vsel %vm628_vm9, %v2748_v54, 0.0  ;;  %v754_v53 = vadd.f32 %v690_v50, %v562_v57  ;;  %vm818_vm1 = vcmp.eq.s32.totalorder %v382_v8, 16 }
  0xa5   : > { %v756_v10 = vadd.f32 %v692_v7, %v564_v59  ;;  %vm820_vm15 = vcmp.eq.s32.totalorder %v384_v19, 16  ;;  %v882_v3 = vsel %vm818_vm1, %v2761_v61, 0.0  ;;  %vm1010_vm7 = vcmp.eq.s32.totalorder %v382_v8, 17 }
  0xa6   : > { %v1836_v13 = vpack.c.bf16 %v1141_v6, %v1139_v49  ;;  %v884_v15 = vsel %vm820_vm15, %v2761_v61, 0.0  ;;  %v946_v4 = vadd.f32 %v882_v3, %v754_v53  ;;  %vm1012_vm5 = vcmp.eq.s32.totalorder %v384_v19, 17 }
  0xa7   : > { %v948_v16 = vadd.f32 %v884_v15, %v756_v10  ;;  %v1074_v17 = vsel %vm1010_vm7, %v2773_v2, 0.0  ;;  %v1076_v18 = vsel %vm1012_vm5, %v2773_v2, 0.0  ;;  %v387_v22 = vsub.s32 %v2491_v45, %v2554_v12 }
  0xa8   : > { %1837 = vmatprep.subr.bf16.mxu0 %v1836_v13  ;;  %v1138_v23 = vadd.f32 %v1074_v17, %v946_v4  ;;  %v389_v24 = vsub.s32 %v2494_v46, %v2554_v12  ;;  %v386_v5 = vsub.s32 %v2491_v45, %v2595_v28  ;;  %v388_v8 = vsub.s32 %v2494_v46, %v2595_v28 }
  0xa9   : > { %v1140_v26 = vadd.f32 %v1076_v18, %v948_v16  ;;  %vm1259_vm11 = vcmp.eq.s32.totalorder %v387_v22, %v2690_v11  ;;  %vm503_vm10 = vcmp.eq.s32.totalorder %v387_v22, 0  ;;  %vm631_vm13 = vcmp.eq.s32.totalorder %v387_v22, 1 }
  0xaa   : > { %vm1261_vm3 = vcmp.eq.s32.totalorder %v389_v24, %v2690_v11  ;;  %vm1258_vm2 = vcmp.eq.s32.totalorder %v386_v5, %v2815_v37  ;;  %vm1260_vm14 = vcmp.eq.s32.totalorder %v388_v8, %v2815_v37  ;;  %vm505_vm12 = vcmp.eq.s32.totalorder %v389_v24, 0 }
  0xab   : > { %v1838_v19 = vpack.c.bf16 %v1140_v26, %v1138_v23  ;;  %vm1911_vm8 = vmpackc.low %vm1261_vm3, %vm1259_vm11  ;;  %v567_v14 = vsel %vm503_vm10, %v2598_v29, 0.0  ;;  %v569_v45 = vsel %vm505_vm12, %v2598_v29, 0.0  ;;  %vm633_vm6 = vcmp.eq.s32.totalorder %v389_v24, 1 }
  0xac   : > { %1912 = vmatprep.subr.msk.bf16.mxu1 %vm1911_vm8, %v2717_v30  ;;  %vm1914_vm4 = vmpackc.low %vm1260_vm14, %vm1258_vm2  ;;  %v695_v46 = vsel %vm631_vm13, %v2610_v31, 0.0  ;;  %v697_v38 = vsel %vm633_vm6, %v2610_v31, 0.0  ;;  %vm823_vm0 = vcmp.eq.s32.totalorder %v387_v22, 16  ;;  %vm825_vm9 = vcmp.eq.s32.totalorder %v389_v24, 16 }
  0xad   : > { %1839 = vmatpush1.bf16.msra.mxu0 %v1838_v19  ;;  %1915 = vmatpush1.bf16.msk.msra.mxu1 %vm1914_vm4, %v2830_v44  ;;  %v759_v39 = vadd.f32 %v695_v46, %v567_v14  ;;  %v761_v43 = vadd.f32 %v697_v38, %v569_v45  ;;  %v887_v40 = vsel %vm823_vm0, %v2619_v33, 0.0  ;;  %v889_v9 = vsel %vm825_vm9, %v2619_v33, 0.0 }
  0xae   : > { %vm1015_vm1 = vcmp.eq.s32.totalorder %v387_v22, 17  ;;  %vm1017_vm15 = vcmp.eq.s32.totalorder %v389_v24, 17  ;;  %vm502_vm7 = vcmp.eq.s32.totalorder %v386_v5, 0  ;;  %vm504_vm5 = vcmp.eq.s32.totalorder %v388_v8, 0 }
  0xaf   : > { %v951_v42 = vadd.f32 %v887_v40, %v759_v39  ;;  %v953_v25 = vadd.f32 %v889_v9, %v761_v43  ;;  %v1079_v27 = vsel %vm1015_vm1, %v2628_v35, 0.0  ;;  %v1081_v34 = vsel %vm1017_vm15, %v2628_v35, 0.0 }
  0xb0   : > { %v566_v36 = vsel %vm502_vm7, %v2738_v32, 0.0  ;;  %v568_v41 = vsel %vm504_vm5, %v2738_v32, 0.0  ;;  %vm630_vm11 = vcmp.eq.s32.totalorder %v386_v5, 1  ;;  %vm632_vm10 = vcmp.eq.s32.totalorder %v388_v8, 1 }
  0xb1   : > { %v1143_v58 = vadd.f32 %v1079_v27, %v951_v42  ;;  %v1145_v21 = vadd.f32 %v1081_v34, %v953_v25  ;;  %v694_v57 = vsel %vm630_vm11, %v2748_v54, 0.0  ;;  %v696_v49 = vsel %vm632_vm10, %v2748_v54, 0.0 }
  0xb2   : > { %v758_v59 = vadd.f32 %v694_v57, %v566_v36  ;;  %v760_v50 = vadd.f32 %v696_v49, %v568_v41  ;;  %vm822_vm13 = vcmp.eq.s32.totalorder %v386_v5, 16  ;;  %vm824_vm3 = vcmp.eq.s32.totalorder %v388_v8, 16 }
  0xb3   : > { %v1840_v6 = vpack.c.bf16 %v1145_v21, %v1143_v58  ;;  %v886_v7 = vsel %vm822_vm13, %v2761_v61, 0.0  ;;  %v888_v53 = vsel %vm824_vm3, %v2761_v61, 0.0  ;;  %vm1014_vm2 = vcmp.eq.s32.totalorder %v386_v5, 17 }
  0xb4   : > { %v950_v10 = vadd.f32 %v886_v7, %v758_v59  ;;  %v952_v3 = vadd.f32 %v888_v53, %v760_v50  ;;  %vm1016_vm14 = vcmp.eq.s32.totalorder %v388_v8, 17  ;;  %v1078_v13 = vsel %vm1014_vm2, %v2773_v2, 0.0 }
  0xb5   : > { %1841 = vmatprep.subr.bf16.mxu0 %v1840_v6  ;;  %v1080_v15 = vsel %vm1016_vm14, %v2773_v2, 0.0  ;;  %v391_v4 = vsub.s32 %v2497_v47, %v2554_v12  ;;  %v393_v16 = vsub.s32 %v2500_v48, %v2554_v12  ;;  %v390_v17 = vsub.s32 %v2497_v47, %v2595_v28 }
  0xb6   : > { %v1142_v18 = vadd.f32 %v1078_v13, %v950_v10  ;;  %v1144_v22 = vadd.f32 %v1080_v15, %v952_v3  ;;  %v392_v23 = vsub.s32 %v2500_v48, %v2595_v28  ;;  %v2935_v24 = vsub.s32 %v2503_v51, %v2554_v12 }
  0xb7   : > { %vm1263_vm12 = vcmp.eq.s32.totalorder %v391_v4, %v2690_v11  ;;  %vm1265_vm8 = vcmp.eq.s32.totalorder %v393_v16, %v2690_v11  ;;  %vm1262_vm6 = vcmp.eq.s32.totalorder %v390_v17, %v2815_v37  ;;  %vm507_vm4 = vcmp.eq.s32.totalorder %v391_v4, 0 }
  0xb8   : > { %v1842_v5 = vpack.c.bf16 %v1144_v22, %v1142_v18  ;;  %vm1917_vm0 = vmpackc.low %vm1265_vm8, %vm1263_vm12  ;;  %vm1264_vm9 = vcmp.eq.s32.totalorder %v392_v23, %v2815_v37  ;;  %vm509_vm1 = vcmp.eq.s32.totalorder %v393_v16, 0  ;;  %v571_v47 = vsel %vm507_vm4, %v2598_v29, 0.0 }
  0xb9   : > { %1918 = vmatprep.subr.msk.bf16.mxu1 %vm1917_vm0, %v2717_v30  ;;  %vm1920_vm15 = vmpackc.low %vm1264_vm9, %vm1262_vm6  ;;  %v573_v48 = vsel %vm509_vm1, %v2598_v29, 0.0  ;;  %vm635_vm7 = vcmp.eq.s32.totalorder %v391_v4, 1  ;;  %vm637_vm5 = vcmp.eq.s32.totalorder %v393_v16, 1  ;;  %vm827_vm11 = vcmp.eq.s32.totalorder %v391_v4, 16 }
  0xba   : > { %1843 = vmatpush1.bf16.msra.mxu0 %v1842_v5  ;;  %1921 = vmatpush1.bf16.msk.msra.mxu1 %vm1920_vm15, %v2830_v44  ;;  %v699_v8 = vsel %vm635_vm7, %v2610_v31, 0.0  ;;  %v701_v26 = vsel %vm637_vm5, %v2610_v31, 0.0  ;;  %vm829_vm10 = vcmp.eq.s32.totalorder %v393_v16, 16  ;;  %v891_v19 = vsel %vm827_vm11, %v2619_v33, 0.0 }
  0xbb   : > { %v763_v14 = vadd.f32 %v699_v8, %v571_v47  ;;  %v765_v45 = vadd.f32 %v701_v26, %v573_v48  ;;  %v893_v46 = vsel %vm829_vm10, %v2619_v33, 0.0  ;;  %vm1019_vm13 = vcmp.eq.s32.totalorder %v391_v4, 17 }
  0xbc   : > { %vm1021_vm3 = vcmp.eq.s32.totalorder %v393_v16, 17  ;;  %v1083_v38 = vsel %vm1019_vm13, %v2628_v35, 0.0  ;;  %vm506_vm2 = vcmp.eq.s32.totalorder %v390_v17, 0  ;;  %vm508_vm14 = vcmp.eq.s32.totalorder %v392_v23, 0 }
  0xbd   : > { %v955_v39 = vadd.f32 %v891_v19, %v763_v14  ;;  %v957_v43 = vadd.f32 %v893_v46, %v765_v45  ;;  %v1085_v40 = vsel %vm1021_vm3, %v2628_v35, 0.0  ;;  %v570_v9 = vsel %vm506_vm2, %v2738_v32, 0.0 }
  0xbe   : > { %v572_v42 = vsel %vm508_vm14, %v2738_v32, 0.0  ;;  %vm634_vm12 = vcmp.eq.s32.totalorder %v390_v17, 1  ;;  %vm636_vm8 = vcmp.eq.s32.totalorder %v392_v23, 1  ;;  %vm826_vm6 = vcmp.eq.s32.totalorder %v390_v17, 16 }
  0xbf   : > { %v1147_v25 = vadd.f32 %v1083_v38, %v955_v39  ;;  %v1149_v27 = vadd.f32 %v1085_v40, %v957_v43  ;;  %v698_v34 = vsel %vm634_vm12, %v2748_v54, 0.0  ;;  %v700_v36 = vsel %vm636_vm8, %v2748_v54, 0.0 }
  0xc0   : > { %v762_v41 = vadd.f32 %v698_v34, %v570_v9  ;;  %v764_v58 = vadd.f32 %v700_v36, %v572_v42  ;;  %vm828_vm4 = vcmp.eq.s32.totalorder %v392_v23, 16  ;;  %v890_v21 = vsel %vm826_vm6, %v2761_v61, 0.0 }
  0xc1   : > { %v1844_v57 = vpack.c.bf16 %v1149_v27, %v1147_v25  ;;  %v892_v49 = vsel %vm828_vm4, %v2761_v61, 0.0  ;;  %vm1018_vm0 = vcmp.eq.s32.totalorder %v390_v17, 17  ;;  %vm1020_vm9 = vcmp.eq.s32.totalorder %v392_v23, 17 }
  0xc2   : > { %v954_v59 = vadd.f32 %v890_v21, %v762_v41  ;;  %v956_v50 = vadd.f32 %v892_v49, %v764_v58  ;;  %v1082_v6 = vsel %vm1018_vm0, %v2773_v2, 0.0  ;;  %v1084_v7 = vsel %vm1020_vm9, %v2773_v2, 0.0 }
  0xc3   : > { %1845 = vmatprep.subr.bf16.mxu0 %v1844_v57  ;;  %v397_v53 = vsub.s32 %v2506_v52, %v2554_v12  ;;  %vm1267_vm1 = vcmp.eq.s32.totalorder %v2935_v24, %v2690_v11  ;;  %v394_v10 = vsub.s32 %v2503_v51, %v2595_v28  ;;  %v396_v3 = vsub.s32 %v2506_v52, %v2595_v28 }
  0xc4   : > { %v1146_v13 = vadd.f32 %v1082_v6, %v954_v59  ;;  %v1148_v15 = vadd.f32 %v1084_v7, %v956_v50  ;;  %vm511_vm15 = vcmp.eq.s32.totalorder %v2935_v24, 0  ;;  %vm639_vm7 = vcmp.eq.s32.totalorder %v2935_v24, 1 }
  0xc5   : > { %vm1269_vm5 = vcmp.eq.s32.totalorder %v397_v53, %v2690_v11  ;;  %vm1266_vm11 = vcmp.eq.s32.totalorder %v394_v10, %v2815_v37  ;;  %vm1268_vm10 = vcmp.eq.s32.totalorder %v396_v3, %v2815_v37  ;;  %vm513_vm13 = vcmp.eq.s32.totalorder %v397_v53, 0 }
  0xc6   : > { %v1846_v4 = vpack.c.bf16 %v1148_v15, %v1146_v13  ;;  %vm1923_vm3 = vmpackc.low %vm1269_vm5, %vm1267_vm1  ;;  %v575_v51 = vsel %vm511_vm15, %v2598_v29, 0.0  ;;  %v577_v16 = vsel %vm513_vm13, %v2598_v29, 0.0  ;;  %vm641_vm2 = vcmp.eq.s32.totalorder %v397_v53, 1 }
  0xc7   : > { %1924 = vmatprep.subr.msk.bf16.mxu1 %vm1923_vm3, %v2717_v30  ;;  %vm1926_vm14 = vmpackc.low %vm1268_vm10, %vm1266_vm11  ;;  %v703_v52 = vsel %vm639_vm7, %v2610_v31, 0.0  ;;  %v705_v17 = vsel %vm641_vm2, %v2610_v31, 0.0  ;;  %vm831_vm12 = vcmp.eq.s32.totalorder %v2935_v24, 16  ;;  %vm833_vm8 = vcmp.eq.s32.totalorder %v397_v53, 16 }
  0xc8   : > { %1847 = vmatpush1.bf16.msra.mxu0 %v1846_v4  ;;  %1927 = vmatpush1.bf16.msk.msra.mxu1 %vm1926_vm14, %v2830_v44  ;;  %v767_v18 = vadd.f32 %v703_v52, %v575_v51  ;;  %v769_v22 = vadd.f32 %v705_v17, %v577_v16  ;;  %v895_v23 = vsel %vm831_vm12, %v2619_v33, 0.0  ;;  %v897_v5 = vsel %vm833_vm8, %v2619_v33, 0.0 }
  0xc9   : > { %vm1023_vm6 = vcmp.eq.s32.totalorder %v2935_v24, 17  ;;  %vm1025_vm4 = vcmp.eq.s32.totalorder %v397_v53, 17  ;;  %vm510_vm0 = vcmp.eq.s32.totalorder %v394_v10, 0  ;;  %vm512_vm9 = vcmp.eq.s32.totalorder %v396_v3, 0 }
  0xca   : > { %v959_v47 = vadd.f32 %v895_v23, %v767_v18  ;;  %v961_v48 = vadd.f32 %v897_v5, %v769_v22  ;;  %v1087_v8 = vsel %vm1023_vm6, %v2628_v35, 0.0  ;;  %v1089_v26 = vsel %vm1025_vm4, %v2628_v35, 0.0 }
  0xcb   : > { %v574_v19 = vsel %vm510_vm0, %v2738_v32, 0.0  ;;  %v576_v14 = vsel %vm512_vm9, %v2738_v32, 0.0  ;;  %vm638_vm1 = vcmp.eq.s32.totalorder %v394_v10, 1  ;;  %vm640_vm15 = vcmp.eq.s32.totalorder %v396_v3, 1 }
  0xcc   : > { %v1151_v45 = vadd.f32 %v1087_v8, %v959_v47  ;;  %v1153_v46 = vadd.f32 %v1089_v26, %v961_v48  ;;  %v702_v38 = vsel %vm638_vm1, %v2748_v54, 0.0  ;;  %v704_v24 = vsel %vm640_vm15, %v2748_v54, 0.0 }
  0xcd   : > { %v766_v39 = vadd.f32 %v702_v38, %v574_v19  ;;  %v768_v43 = vadd.f32 %v704_v24, %v576_v14  ;;  %vm830_vm7 = vcmp.eq.s32.totalorder %v394_v10, 16  ;;  %vm832_vm5 = vcmp.eq.s32.totalorder %v396_v3, 16 }
  0xce   : > { %v1848_v40 = vpack.c.bf16 %v1153_v46, %v1151_v45  ;;  %v894_v9 = vsel %vm830_vm7, %v2761_v61, 0.0  ;;  %v896_v42 = vsel %vm832_vm5, %v2761_v61, 0.0  ;;  %vm1022_vm11 = vcmp.eq.s32.totalorder %v394_v10, 17 }
  0xcf   : > { %v958_v25 = vadd.f32 %v894_v9, %v766_v39  ;;  %v960_v27 = vadd.f32 %v896_v42, %v768_v43  ;;  %vm1024_vm10 = vcmp.eq.s32.totalorder %v396_v3, 17  ;;  %v1086_v34 = vsel %vm1022_vm11, %v2773_v2, 0.0 }
  0xd0   : > { %1849 = vmatprep.subr.bf16.mxu0 %v1848_v40  ;;  %v1088_v36 = vsel %vm1024_vm10, %v2773_v2, 0.0  ;;  %v399_v41 = vsub.s32 %v2509_v55, %v2554_v12  ;;  %v401_v58 = vsub.s32 %v2512_v56, %v2554_v12  ;;  %v398_v21 = vsub.s32 %v2509_v55, %v2595_v28 }
  0xd1   : > { %v1150_v57 = vadd.f32 %v1086_v34, %v958_v25  ;;  %v1152_v49 = vadd.f32 %v1088_v36, %v960_v27  ;;  %v400_v59 = vsub.s32 %v2512_v56, %v2595_v28  ;;  %v3002_v50 = vsub.s32 %v2517_v60, %v2554_v12 }
  0xd2   : > { %vm1271_vm13 = vcmp.eq.s32.totalorder %v399_v41, %v2690_v11  ;;  %vm1273_vm3 = vcmp.eq.s32.totalorder %v401_v58, %v2690_v11  ;;  %vm1270_vm2 = vcmp.eq.s32.totalorder %v398_v21, %v2815_v37  ;;  %vm515_vm14 = vcmp.eq.s32.totalorder %v399_v41, 0 }
  0xd3   : > { %v1850_v6 = vpack.c.bf16 %v1152_v49, %v1150_v57  ;;  %vm1929_vm12 = vmpackc.low %vm1273_vm3, %vm1271_vm13  ;;  %vm1272_vm8 = vcmp.eq.s32.totalorder %v400_v59, %v2815_v37  ;;  %vm517_vm6 = vcmp.eq.s32.totalorder %v401_v58, 0  ;;  %v579_v55 = vsel %vm515_vm14, %v2598_v29, 0.0 }
  0xd4   : > { %1930 = vmatprep.subr.msk.bf16.mxu1 %vm1929_vm12, %v2717_v30  ;;  %vm1932_vm4 = vmpackc.low %vm1272_vm8, %vm1270_vm2  ;;  %v581_v56 = vsel %vm517_vm6, %v2598_v29, 0.0  ;;  %vm643_vm0 = vcmp.eq.s32.totalorder %v399_v41, 1  ;;  %vm645_vm9 = vcmp.eq.s32.totalorder %v401_v58, 1  ;;  %vm835_vm1 = vcmp.eq.s32.totalorder %v399_v41, 16 }
  0xd5   : > { %1851 = vmatpush1.bf16.msra.mxu0 %v1850_v6  ;;  %1933 = vmatpush1.bf16.msk.msra.mxu1 %vm1932_vm4, %v2830_v44  ;;  %v707_v7 = vsel %vm643_vm0, %v2610_v31, 0.0  ;;  %v709_v53 = vsel %vm645_vm9, %v2610_v31, 0.0  ;;  %vm837_vm15 = vcmp.eq.s32.totalorder %v401_v58, 16  ;;  %v899_v10 = vsel %vm835_vm1, %v2619_v33, 0.0 }
  0xd6   : > { %v771_v3 = vadd.f32 %v707_v7, %v579_v55  ;;  %v773_v13 = vadd.f32 %v709_v53, %v581_v56  ;;  %v901_v15 = vsel %vm837_vm15, %v2619_v33, 0.0  ;;  %vm1027_vm7 = vcmp.eq.s32.totalorder %v399_v41, 17 }
  0xd7   : > { %vm1029_vm5 = vcmp.eq.s32.totalorder %v401_v58, 17  ;;  %v1091_v4 = vsel %vm1027_vm7, %v2628_v35, 0.0  ;;  %vm514_vm11 = vcmp.eq.s32.totalorder %v398_v21, 0  ;;  %vm516_vm10 = vcmp.eq.s32.totalorder %v400_v59, 0 }
  0xd8   : > { %v963_v51 = vadd.f32 %v899_v10, %v771_v3  ;;  %v965_v16 = vadd.f32 %v901_v15, %v773_v13  ;;  %v1093_v52 = vsel %vm1029_vm5, %v2628_v35, 0.0  ;;  %v578_v17 = vsel %vm514_vm11, %v2738_v32, 0.0 }
  0xd9   : > { %v580_v18 = vsel %vm516_vm10, %v2738_v32, 0.0  ;;  %vm642_vm13 = vcmp.eq.s32.totalorder %v398_v21, 1  ;;  %vm644_vm3 = vcmp.eq.s32.totalorder %v400_v59, 1  ;;  %vm834_vm2 = vcmp.eq.s32.totalorder %v398_v21, 16 }
  0xda   : > { %v1155_v22 = vadd.f32 %v1091_v4, %v963_v51  ;;  %v1157_v23 = vadd.f32 %v1093_v52, %v965_v16  ;;  %v706_v5 = vsel %vm642_vm13, %v2748_v54, 0.0  ;;  %v708_v47 = vsel %vm644_vm3, %v2748_v54, 0.0 }
  0xdb   : > { %v770_v48 = vadd.f32 %v706_v5, %v578_v17  ;;  %v772_v8 = vadd.f32 %v708_v47, %v580_v18  ;;  %vm836_vm14 = vcmp.eq.s32.totalorder %v400_v59, 16  ;;  %v898_v26 = vsel %vm834_vm2, %v2761_v61, 0.0 }
  0xdc   : > { %v1852_v19 = vpack.c.bf16 %v1157_v23, %v1155_v22  ;;  %v900_v14 = vsel %vm836_vm14, %v2761_v61, 0.0  ;;  %vm1026_vm12 = vcmp.eq.s32.totalorder %v398_v21, 17  ;;  %vm1028_vm8 = vcmp.eq.s32.totalorder %v400_v59, 17 }
  0xdd   : > { %v962_v45 = vadd.f32 %v898_v26, %v770_v48  ;;  %v964_v46 = vadd.f32 %v900_v14, %v772_v8  ;;  %v1090_v38 = vsel %vm1026_vm12, %v2773_v2, 0.0  ;;  %v1092_v24 = vsel %vm1028_vm8, %v2773_v2, 0.0 }
  0xde   : > { %1853 = vmatprep.subr.bf16.mxu0 %v1852_v19  ;;  %v405_v39 = vsub.s32 %v2520_v62, %v2554_v12  ;;  %vm1275_vm6 = vcmp.eq.s32.totalorder %v3002_v50, %v2690_v11  ;;  %v402_v43 = vsub.s32 %v2517_v60, %v2595_v28  ;;  %v404_v40 = vsub.s32 %v2520_v62, %v2595_v28 }
  0xdf   : > { %v1154_v9 = vadd.f32 %v1090_v38, %v962_v45  ;;  %v1156_v42 = vadd.f32 %v1092_v24, %v964_v46  ;;  %vm519_vm4 = vcmp.eq.s32.totalorder %v3002_v50, 0  ;;  %vm647_vm0 = vcmp.eq.s32.totalorder %v3002_v50, 1 }
  0xe0   : > { %vm1277_vm9 = vcmp.eq.s32.totalorder %v405_v39, %v2690_v11  ;;  %vm1274_vm1 = vcmp.eq.s32.totalorder %v402_v43, %v2815_v37  ;;  %vm1276_vm15 = vcmp.eq.s32.totalorder %v404_v40, %v2815_v37  ;;  %vm521_vm7 = vcmp.eq.s32.totalorder %v405_v39, 0 }
  0xe1   : > { %v1854_v25 = vpack.c.bf16 %v1156_v42, %v1154_v9  ;;  %vm1935_vm5 = vmpackc.low %vm1277_vm9, %vm1275_vm6  ;;  %v583_v60 = vsel %vm519_vm4, %v2598_v29, 0.0  ;;  %v585_v27 = vsel %vm521_vm7, %v2598_v29, 0.0  ;;  %vm649_vm11 = vcmp.eq.s32.totalorder %v405_v39, 1 }
  0xe2   : > { %1936 = vmatprep.subr.msk.bf16.mxu1 %vm1935_vm5, %v2717_v30  ;;  %vm1938_vm10 = vmpackc.low %vm1276_vm15, %vm1274_vm1  ;;  %v711_v62 = vsel %vm647_vm0, %v2610_v31, 0.0  ;;  %v713_v34 = vsel %vm649_vm11, %v2610_v31, 0.0  ;;  %vm839_vm13 = vcmp.eq.s32.totalorder %v3002_v50, 16  ;;  %vm841_vm3 = vcmp.eq.s32.totalorder %v405_v39, 16 }
  0xe3   : > { %1855 = vmatpush1.bf16.msra.mxu0 %v1854_v25  ;;  %1939 = vmatpush1.bf16.msk.msra.mxu1 %vm1938_vm10, %v2830_v44  ;;  %v775_v36 = vadd.f32 %v711_v62, %v583_v60  ;;  %v777_v41 = vadd.f32 %v713_v34, %v585_v27  ;;  %v903_v58 = vsel %vm839_vm13, %v2619_v33, 0.0  ;;  %v905_v21 = vsel %vm841_vm3, %v2619_v33, 0.0 }
  0xe4   : > { %vm1031_vm2 = vcmp.eq.s32.totalorder %v3002_v50, 17  ;;  %vm1033_vm14 = vcmp.eq.s32.totalorder %v405_v39, 17  ;;  %vm518_vm12 = vcmp.eq.s32.totalorder %v402_v43, 0  ;;  %vm520_vm8 = vcmp.eq.s32.totalorder %v404_v40, 0 }
  0xe5   : > { %v967_v57 = vadd.f32 %v903_v58, %v775_v36  ;;  %v969_v49 = vadd.f32 %v905_v21, %v777_v41  ;;  %v1095_v59 = vsel %vm1031_vm2, %v2628_v35, 0.0  ;;  %v1097_v6 = vsel %vm1033_vm14, %v2628_v35, 0.0 }
  0xe6   : > { %v582_v55 = vsel %vm518_vm12, %v2738_v32, 0.0  ;;  %v584_v56 = vsel %vm520_vm8, %v2738_v32, 0.0  ;;  %vm646_vm6 = vcmp.eq.s32.totalorder %v402_v43, 1  ;;  %vm648_vm4 = vcmp.eq.s32.totalorder %v404_v40, 1 }
  0xe7   : > { %v1159_v7 = vadd.f32 %v1095_v59, %v967_v57  ;;  %v1161_v53 = vadd.f32 %v1097_v6, %v969_v49  ;;  %v710_v10 = vsel %vm646_vm6, %v2748_v54, 0.0  ;;  %v712_v50 = vsel %vm648_vm4, %v2748_v54, 0.0 }
  0xe8   : > { %v774_v3 = vadd.f32 %v710_v10, %v582_v55  ;;  %v776_v13 = vadd.f32 %v712_v50, %v584_v56  ;;  %vm838_vm0 = vcmp.eq.s32.totalorder %v402_v43, 16  ;;  %vm840_vm9 = vcmp.eq.s32.totalorder %v404_v40, 16 }
  0xe9   : > { %v1856_v15 = vpack.c.bf16 %v1161_v53, %v1159_v7  ;;  %v902_v4 = vsel %vm838_vm0, %v2761_v61, 0.0  ;;  %v904_v51 = vsel %vm840_vm9, %v2761_v61, 0.0  ;;  %vm1030_vm1 = vcmp.eq.s32.totalorder %v402_v43, 17 }
  0xea   : > { %v966_v16 = vadd.f32 %v902_v4, %v774_v3  ;;  %v968_v52 = vadd.f32 %v904_v51, %v776_v13  ;;  %vm1032_vm15 = vcmp.eq.s32.totalorder %v404_v40, 17  ;;  %v1094_v17 = vsel %vm1030_vm1, %v2773_v2, 0.0 }
  0xeb   : > { %1857 = vmatprep.subr.bf16.mxu0 %v1856_v15  ;;  %v1096_v18 = vsel %vm1032_vm15, %v2773_v2, 0.0  ;;  %v407_v22 = vsub.s32 %v2523_v63, %v2554_v12  ;;  %v409_v23 = vsub.s32 %v2526_v1, %v2554_v12  ;;  %v406_v5 = vsub.s32 %v2523_v63, %v2595_v28 }
  0xec   : > { %v1158_v47 = vadd.f32 %v1094_v17, %v966_v16  ;;  %v1160_v48 = vadd.f32 %v1096_v18, %v968_v52  ;;  %v408_v8 = vsub.s32 %v2526_v1, %v2595_v28  ;;  %v291_v26 = vadd.s32 144, %v2471_v20 }
  0xed   : > { %vm1279_vm7 = vcmp.eq.s32.totalorder %v407_v22, %v2690_v11  ;;  %vm1281_vm5 = vcmp.eq.s32.totalorder %v409_v23, %v2690_v11  ;;  %vm1278_vm11 = vcmp.eq.s32.totalorder %v406_v5, %v2815_v37  ;;  %vm523_vm10 = vcmp.eq.s32.totalorder %v407_v22, 0 }
  0xee   : > { %v1858_v19 = vpack.c.bf16 %v1160_v48, %v1158_v47  ;;  %vm1941_vm13 = vmpackc.low %vm1281_vm5, %vm1279_vm7  ;;  %vm1280_vm3 = vcmp.eq.s32.totalorder %v408_v8, %v2815_v37  ;;  %vm525_vm2 = vcmp.eq.s32.totalorder %v409_v23, 0  ;;  %v587_v63 = vsel %vm523_vm10, %v2598_v29, 0.0 }
  0xef   : > { %1942 = vmatprep.subr.msk.bf16.mxu1 %vm1941_vm13, %v2717_v30  ;;  %vm1944_vm14 = vmpackc.low %vm1280_vm3, %vm1278_vm11  ;;  %v589_v1 = vsel %vm525_vm2, %v2598_v29, 0.0  ;;  %vm651_vm12 = vcmp.eq.s32.totalorder %v407_v22, 1  ;;  %vm653_vm8 = vcmp.eq.s32.totalorder %v409_v23, 1  ;;  %vm843_vm6 = vcmp.eq.s32.totalorder %v407_v22, 16 }
  0xf0   : > { %1859 = vmatpush1.bf16.msra.mxu0 %v1858_v19  ;;  %1945 = vmatpush1.bf16.msk.msra.mxu1 %vm1944_vm14, %v2830_v44  ;;  %v715_v14 = vsel %vm651_vm12, %v2610_v31, 0.0  ;;  %v717_v45 = vsel %vm653_vm8, %v2610_v31, 0.0  ;;  %vm845_vm4 = vcmp.eq.s32.totalorder %v409_v23, 16  ;;  %v907_v46 = vsel %vm843_vm6, %v2619_v33, 0.0 }
  0xf1   : > { %v779_v38 = vadd.f32 %v715_v14, %v587_v63  ;;  %v781_v24 = vadd.f32 %v717_v45, %v589_v1  ;;  %v909_v39 = vsel %vm845_vm4, %v2619_v33, 0.0  ;;  %vm1035_vm0 = vcmp.eq.s32.totalorder %v407_v22, 17 }
  0xf2   : > { %vm1037_vm9 = vcmp.eq.s32.totalorder %v409_v23, 17  ;;  %v1099_v43 = vsel %vm1035_vm0, %v2628_v35, 0.0  ;;  %vm522_vm1 = vcmp.eq.s32.totalorder %v406_v5, 0  ;;  %vm524_vm15 = vcmp.eq.s32.totalorder %v408_v8, 0 }
  0xf3   : > { %v971_v40 = vadd.f32 %v907_v46, %v779_v38  ;;  %v973_v9 = vadd.f32 %v909_v39, %v781_v24  ;;  %v1101_v42 = vsel %vm1037_vm9, %v2628_v35, 0.0  ;;  %v586_v25 = vsel %vm522_vm1, %v2738_v32, 0.0 }
  0xf4   : > { %v588_v60 = vsel %vm524_vm15, %v2738_v32, 0.0  ;;  %vm650_vm7 = vcmp.eq.s32.totalorder %v406_v5, 1  ;;  %vm652_vm5 = vcmp.eq.s32.totalorder %v408_v8, 1  ;;  %vm842_vm11 = vcmp.eq.s32.totalorder %v406_v5, 16 }
  0xf5   : > { %v1163_v27 = vadd.f32 %v1099_v43, %v971_v40  ;;  %v1165_v62 = vadd.f32 %v1101_v42, %v973_v9  ;;  %v714_v34 = vsel %vm650_vm7, %v2748_v54, 0.0  ;;  %v716_v36 = vsel %vm652_vm5, %v2748_v54, 0.0 }
  0xf6   : > { %v778_v41 = vadd.f32 %v714_v34, %v586_v25  ;;  %v780_v58 = vadd.f32 %v716_v36, %v588_v60  ;;  %vm844_vm10 = vcmp.eq.s32.totalorder %v408_v8, 16  ;;  %v906_v21 = vsel %vm842_vm11, %v2761_v61, 0.0 }
  0xf7   : > { %v1860_v57 = vpack.c.bf16 %v1165_v62, %v1163_v27  ;;  %v908_v49 = vsel %vm844_vm10, %v2761_v61, 0.0  ;;  %vm1034_vm13 = vcmp.eq.s32.totalorder %v406_v5, 17  ;;  %vm1036_vm3 = vcmp.eq.s32.totalorder %v408_v8, 17 }
  0xf8   : > { %v970_v59 = vadd.f32 %v906_v21, %v778_v41  ;;  %v972_v6 = vadd.f32 %v908_v49, %v780_v58  ;;  %v1098_v55 = vsel %vm1034_vm13, %v2773_v2, 0.0  ;;  %v1100_v56 = vsel %vm1036_vm3, %v2773_v2, 0.0 }
  0xf9   : > { %1861 = vmatprep.subr.bf16.mxu0 %v1860_v57  ;;  %v292_v7 = vadd.s32 152, %v2471_v20  ;;  %v411_v53 = vsub.s32 %v291_v26, %v2554_v12  ;;  %v410_v10 = vsub.s32 %v291_v26, %v2595_v28  ;;  %v3094_v50 = vadd.s32 160, %v2471_v20 }
  0xfa   : > { %v1162_v3 = vadd.f32 %v1098_v55, %v970_v59  ;;  %v1164_v13 = vadd.f32 %v1100_v56, %v972_v6  ;;  %v294_v15 = vadd.s32 168, %v2471_v20  ;;  %v3098_v4 = vadd.s32 176, %v2471_v20 }
  0xfb   : > { %v413_v51 = vsub.s32 %v292_v7, %v2554_v12  ;;  %vm1283_vm2 = vcmp.eq.s32.totalorder %v411_v53, %v2690_v11  ;;  %v412_v16 = vsub.s32 %v292_v7, %v2595_v28  ;;  %vm1282_vm14 = vcmp.eq.s32.totalorder %v410_v10, %v2815_v37 }
  0xfc   : > { %v1862_v52 = vpack.c.bf16 %v1164_v13, %v1162_v3  ;;  %vm527_vm12 = vcmp.eq.s32.totalorder %v411_v53, 0  ;;  %vm655_vm8 = vcmp.eq.s32.totalorder %v411_v53, 1  ;;  %vm847_vm6 = vcmp.eq.s32.totalorder %v411_v53, 16 }
  0xfd   : > { %vm1285_vm4 = vcmp.eq.s32.totalorder %v413_v51, %v2690_v11  ;;  %vm1284_vm0 = vcmp.eq.s32.totalorder %v412_v16, %v2815_v37  ;;  %vm529_vm9 = vcmp.eq.s32.totalorder %v413_v51, 0  ;;  %v591_v17 = vsel %vm527_vm12, %v2598_v29, 0.0 }
  0xfe   : > { %1863 = vmatpush1.bf16.msra.mxu0 %v1862_v52  ;;  %vm1947_vm1 = vmpackc.low %vm1285_vm4, %vm1283_vm2  ;;  %v593_v18 = vsel %vm529_vm9, %v2598_v29, 0.0  ;;  %vm657_vm15 = vcmp.eq.s32.totalorder %v413_v51, 1  ;;  %v719_v22 = vsel %vm655_vm8, %v2610_v31, 0.0  ;;  %vm849_vm7 = vcmp.eq.s32.totalorder %v413_v51, 16 }
  0xff   : > { %1948 = vmatprep.subr.msk.bf16.mxu1 %vm1947_vm1, %v2717_v30  ;;  %vm1950_vm5 = vmpackc.low %vm1284_vm0, %vm1282_vm14  ;;  %v721_v23 = vsel %vm657_vm15, %v2610_v31, 0.0  ;;  %v783_v5 = vadd.f32 %v719_v22, %v591_v17  ;;  %v911_v47 = vsel %vm847_vm6, %v2619_v33, 0.0  ;;  %v913_v48 = vsel %vm849_vm7, %v2619_v33, 0.0 }
 0x100   : > { %1951 = vmatpush1.bf16.msk.msra.mxu1 %vm1950_vm5, %v2830_v44  ;;  %v785_v8 = vadd.f32 %v721_v23, %v593_v18  ;;  %vm1039_vm11 = vcmp.eq.s32.totalorder %v411_v53, 17  ;;  %vm1041_vm10 = vcmp.eq.s32.totalorder %v413_v51, 17  ;;  %vm526_vm13 = vcmp.eq.s32.totalorder %v410_v10, 0 }
 0x101   : > { %v975_v26 = vadd.f32 %v911_v47, %v783_v5  ;;  %v1103_v19 = vsel %vm1039_vm11, %v2628_v35, 0.0  ;;  %v1105_v63 = vsel %vm1041_vm10, %v2628_v35, 0.0  ;;  %vm528_vm3 = vcmp.eq.s32.totalorder %v412_v16, 0 }
 0x102   : > { %v977_v1 = vadd.f32 %v913_v48, %v785_v8  ;;  %v590_v14 = vsel %vm526_vm13, %v2738_v32, 0.0  ;;  %v592_v45 = vsel %vm528_vm3, %v2738_v32, 0.0  ;;  %vm654_vm2 = vcmp.eq.s32.totalorder %v410_v10, 1 }
 0x103   : > { %v1167_v46 = vadd.f32 %v1103_v19, %v975_v26  ;;  %vm656_vm14 = vcmp.eq.s32.totalorder %v412_v16, 1  ;;  %v718_v38 = vsel %vm654_vm2, %v2748_v54, 0.0  ;;  %vm846_vm12 = vcmp.eq.s32.totalorder %v410_v10, 16 }
 0x104   : > { %v1169_v24 = vadd.f32 %v1105_v63, %v977_v1  ;;  %v720_v39 = vsel %vm656_vm14, %v2748_v54, 0.0  ;;  %v782_v43 = vadd.f32 %v718_v38, %v590_v14  ;;  %vm848_vm8 = vcmp.eq.s32.totalorder %v412_v16, 16 }
 0x105   : > { %v784_v40 = vadd.f32 %v720_v39, %v592_v45  ;;  %v910_v9 = vsel %vm846_vm12, %v2761_v61, 0.0  ;;  %v912_v42 = vsel %vm848_vm8, %v2761_v61, 0.0  ;;  %vm1038_vm6 = vcmp.eq.s32.totalorder %v410_v10, 17 }
 0x106   : > { %v1864_v25 = vpack.c.bf16 %v1169_v24, %v1167_v46  ;;  %v974_v60 = vadd.f32 %v910_v9, %v782_v43  ;;  %vm1040_vm4 = vcmp.eq.s32.totalorder %v412_v16, 17  ;;  %v1102_v27 = vsel %vm1038_vm6, %v2773_v2, 0.0 }
 0x107   : > { %v976_v62 = vadd.f32 %v912_v42, %v784_v40  ;;  %v1104_v34 = vsel %vm1040_vm4, %v2773_v2, 0.0  ;;  %v415_v36 = vsub.s32 %v3094_v50, %v2554_v12  ;;  %v417_v41 = vsub.s32 %v294_v15, %v2554_v12 }
 0x108   : > { %1865 = vmatprep.subr.bf16.mxu0 %v1864_v25  ;;  %v1166_v58 = vadd.f32 %v1102_v27, %v974_v60  ;;  %v414_v21 = vsub.s32 %v3094_v50, %v2595_v28  ;;  %v416_v57 = vsub.s32 %v294_v15, %v2595_v28  ;;  %v296_v49 = vadd.s32 184, %v2471_v20 }
 0x109   : > { %v1168_v59 = vadd.f32 %v1104_v34, %v976_v62  ;;  %vm1287_vm0 = vcmp.eq.s32.totalorder %v415_v36, %v2690_v11  ;;  %vm1289_vm9 = vcmp.eq.s32.totalorder %v417_v41, %v2690_v11  ;;  %vm531_vm1 = vcmp.eq.s32.totalorder %v415_v36, 0 }
 0x10a   : > { %vm1953_vm15 = vmpackc.low %vm1289_vm9, %vm1287_vm0  ;;  %vm1286_vm7 = vcmp.eq.s32.totalorder %v414_v21, %v2815_v37  ;;  %vm1288_vm5 = vcmp.eq.s32.totalorder %v416_v57, %v2815_v37  ;;  %vm533_vm11 = vcmp.eq.s32.totalorder %v417_v41, 0  ;;  %v595_v6 = vsel %vm531_vm1, %v2598_v29, 0.0 }
 0x10b   : > { %v1866_v55 = vpack.c.bf16 %v1168_v59, %v1166_v58  ;;  %1954 = vmatprep.subr.msk.bf16.mxu1 %vm1953_vm15, %v2717_v30  ;;  %vm1956_vm10 = vmpackc.low %vm1288_vm5, %vm1286_vm7  ;;  %v597_v56 = vsel %vm533_vm11, %v2598_v29, 0.0  ;;  %vm659_vm13 = vcmp.eq.s32.totalorder %v415_v36, 1  ;;  %vm661_vm3 = vcmp.eq.s32.totalorder %v417_v41, 1 }
 0x10c   : > { %1957 = vmatpush1.bf16.msk.msra.mxu1 %vm1956_vm10, %v2830_v44  ;;  %v723_v7 = vsel %vm659_vm13, %v2610_v31, 0.0  ;;  %v725_v53 = vsel %vm661_vm3, %v2610_v31, 0.0  ;;  %vm851_vm2 = vcmp.eq.s32.totalorder %v415_v36, 16  ;;  %vm853_vm14 = vcmp.eq.s32.totalorder %v417_v41, 16 }
 0x10d   : > { %1867 = vmatpush1.bf16.msra.mxu0 %v1866_v55  ;;  %v787_v10 = vadd.f32 %v723_v7, %v595_v6  ;;  %v789_v50 = vadd.f32 %v725_v53, %v597_v56  ;;  %v915_v3 = vsel %vm851_vm2, %v2619_v33, 0.0  ;;  %v917_v13 = vsel %vm853_vm14, %v2619_v33, 0.0 }
 0x10e   : > { %vm1043_vm12 = vcmp.eq.s32.totalorder %v415_v36, 17  ;;  %vm1045_vm8 = vcmp.eq.s32.totalorder %v417_v41, 17  ;;  %vm530_vm6 = vcmp.eq.s32.totalorder %v414_v21, 0  ;;  %vm532_vm4 = vcmp.eq.s32.totalorder %v416_v57, 0 }
 0x10f   : > { %v979_v15 = vadd.f32 %v915_v3, %v787_v10  ;;  %v981_v51 = vadd.f32 %v917_v13, %v789_v50  ;;  %v1107_v16 = vsel %vm1043_vm12, %v2628_v35, 0.0  ;;  %v1109_v52 = vsel %vm1045_vm8, %v2628_v35, 0.0 }
 0x110   : > { %v594_v17 = vsel %vm530_vm6, %v2738_v32, 0.0  ;;  %v596_v18 = vsel %vm532_vm4, %v2738_v32, 0.0  ;;  %vm658_vm0 = vcmp.eq.s32.totalorder %v414_v21, 1  ;;  %vm660_vm9 = vcmp.eq.s32.totalorder %v416_v57, 1 }
 0x111   : > { %v1171_v22 = vadd.f32 %v1107_v16, %v979_v15  ;;  %v1173_v23 = vadd.f32 %v1109_v52, %v981_v51  ;;  %v722_v5 = vsel %vm658_vm0, %v2748_v54, 0.0  ;;  %v724_v47 = vsel %vm660_vm9, %v2748_v54, 0.0 }
 0x112   : > { %v786_v48 = vadd.f32 %v722_v5, %v594_v17  ;;  %v788_v8 = vadd.f32 %v724_v47, %v596_v18  ;;  %vm850_vm1 = vcmp.eq.s32.totalorder %v414_v21, 16  ;;  %vm852_vm15 = vcmp.eq.s32.totalorder %v416_v57, 16 }
 0x113   : > { %v1868_v26 = vpack.c.bf16 %v1173_v23, %v1171_v22  ;;  %v914_v19 = vsel %vm850_vm1, %v2761_v61, 0.0  ;;  %v916_v63 = vsel %vm852_vm15, %v2761_v61, 0.0  ;;  %vm1042_vm7 = vcmp.eq.s32.totalorder %v414_v21, 17 }
 0x114   : > { %v978_v1 = vadd.f32 %v914_v19, %v786_v48  ;;  %v980_v14 = vadd.f32 %v916_v63, %v788_v8  ;;  %vm1044_vm5 = vcmp.eq.s32.totalorder %v416_v57, 17  ;;  %v1106_v45 = vsel %vm1042_vm7, %v2773_v2, 0.0 }
 0x115   : > { %1869 = vmatprep.subr.bf16.mxu0 %v1868_v26  ;;  %v1108_v46 = vsel %vm1044_vm5, %v2773_v2, 0.0  ;;  %v419_v38 = vsub.s32 %v3098_v4, %v2554_v12  ;;  %v421_v24 = vsub.s32 %v296_v49, %v2554_v12  ;;  %v418_v39 = vsub.s32 %v3098_v4, %v2595_v28 }
 0x116   : > { %v1170_v43 = vadd.f32 %v1106_v45, %v978_v1  ;;  %v1172_v40 = vadd.f32 %v1108_v46, %v980_v14  ;;  %v420_v9 = vsub.s32 %v296_v49, %v2595_v28  ;;  %v297_v42 = vadd.s32 192, %v2471_v20 }
 0x117   : > { %vm1291_vm11 = vcmp.eq.s32.totalorder %v419_v38, %v2690_v11  ;;  %vm1293_vm10 = vcmp.eq.s32.totalorder %v421_v24, %v2690_v11  ;;  %vm1290_vm13 = vcmp.eq.s32.totalorder %v418_v39, %v2815_v37  ;;  %vm535_vm3 = vcmp.eq.s32.totalorder %v419_v38, 0 }
 0x118   : > { %v1870_v25 = vpack.c.bf16 %v1172_v40, %v1170_v43  ;;  %vm1959_vm2 = vmpackc.low %vm1293_vm10, %vm1291_vm11  ;;  %vm1292_vm14 = vcmp.eq.s32.totalorder %v420_v9, %v2815_v37  ;;  %vm537_vm12 = vcmp.eq.s32.totalorder %v421_v24, 0  ;;  %v599_v4 = vsel %vm535_vm3, %v2598_v29, 0.0 }
 0x119   : > { %1960 = vmatprep.subr.msk.bf16.mxu1 %vm1959_vm2, %v2717_v30  ;;  %vm1962_vm8 = vmpackc.low %vm1292_vm14, %vm1290_vm13  ;;  %v601_v60 = vsel %vm537_vm12, %v2598_v29, 0.0  ;;  %vm663_vm6 = vcmp.eq.s32.totalorder %v419_v38, 1  ;;  %vm665_vm4 = vcmp.eq.s32.totalorder %v421_v24, 1  ;;  %vm855_vm0 = vcmp.eq.s32.totalorder %v419_v38, 16 }
 0x11a   : > { %1871 = vmatpush1.bf16.msra.mxu0 %v1870_v25  ;;  %1963 = vmatpush1.bf16.msk.msra.mxu1 %vm1962_vm8, %v2830_v44  ;;  %v727_v27 = vsel %vm663_vm6, %v2610_v31, 0.0  ;;  %v729_v62 = vsel %vm665_vm4, %v2610_v31, 0.0  ;;  %vm857_vm9 = vcmp.eq.s32.totalorder %v421_v24, 16  ;;  %v919_v34 = vsel %vm855_vm0, %v2619_v33, 0.0 }
 0x11b   : > { %v791_v36 = vadd.f32 %v727_v27, %v599_v4  ;;  %v793_v41 = vadd.f32 %v729_v62, %v601_v60  ;;  %v921_v58 = vsel %vm857_vm9, %v2619_v33, 0.0  ;;  %vm1047_vm1 = vcmp.eq.s32.totalorder %v419_v38, 17 }
 0x11c   : > { %vm1049_vm15 = vcmp.eq.s32.totalorder %v421_v24, 17  ;;  %v1111_v21 = vsel %vm1047_vm1, %v2628_v35, 0.0  ;;  %vm534_vm7 = vcmp.eq.s32.totalorder %v418_v39, 0  ;;  %vm536_vm5 = vcmp.eq.s32.totalorder %v420_v9, 0 }
 0x11d   : > { %v983_v57 = vadd.f32 %v919_v34, %v791_v36  ;;  %v985_v49 = vadd.f32 %v921_v58, %v793_v41  ;;  %v1113_v59 = vsel %vm1049_vm15, %v2628_v35, 0.0  ;;  %v598_v6 = vsel %vm534_vm7, %v2738_v32, 0.0 }
 0x11e   : > { %v600_v55 = vsel %vm536_vm5, %v2738_v32, 0.0  ;;  %vm662_vm11 = vcmp.eq.s32.totalorder %v418_v39, 1  ;;  %vm664_vm10 = vcmp.eq.s32.totalorder %v420_v9, 1  ;;  %vm854_vm13 = vcmp.eq.s32.totalorder %v418_v39, 16 }
 0x11f   : > { %v1175_v56 = vadd.f32 %v1111_v21, %v983_v57  ;;  %v1177_v7 = vadd.f32 %v1113_v59, %v985_v49  ;;  %v726_v53 = vsel %vm662_vm11, %v2748_v54, 0.0  ;;  %v728_v10 = vsel %vm664_vm10, %v2748_v54, 0.0 }
 0x120   : > { %v790_v50 = vadd.f32 %v726_v53, %v598_v6  ;;  %v792_v3 = vadd.f32 %v728_v10, %v600_v55  ;;  %vm856_vm3 = vcmp.eq.s32.totalorder %v420_v9, 16  ;;  %v918_v13 = vsel %vm854_vm13, %v2761_v61, 0.0 }
 0x121   : > { %v1872_v15 = vpack.c.bf16 %v1177_v7, %v1175_v56  ;;  %v920_v51 = vsel %vm856_vm3, %v2761_v61, 0.0  ;;  %vm1046_vm2 = vcmp.eq.s32.totalorder %v418_v39, 17  ;;  %vm1048_vm14 = vcmp.eq.s32.totalorder %v420_v9, 17 }
 0x122   : > { %v982_v16 = vadd.f32 %v918_v13, %v790_v50  ;;  %v984_v52 = vadd.f32 %v920_v51, %v792_v3  ;;  %v1110_v17 = vsel %vm1046_vm2, %v2773_v2, 0.0  ;;  %v1112_v18 = vsel %vm1048_vm14, %v2773_v2, 0.0 }
 0x123   : > { %1873 = vmatprep.subr.bf16.mxu0 %v1872_v15  ;;  %v298_v22 = vadd.s32 200, %v2471_v20  ;;  %v423_v23 = vsub.s32 %v297_v42, %v2554_v12  ;;  %v422_v5 = vsub.s32 %v297_v42, %v2595_v28  ;;  %v3188_v47 = vadd.s32 208, %v2471_v20 }
 0x124   : > { %v1174_v48 = vadd.f32 %v1110_v17, %v982_v16  ;;  %v1176_v8 = vadd.f32 %v1112_v18, %v984_v52  ;;  %v300_v26 = vadd.s32 216, %v2471_v20  ;;  %v3192_v19 = vadd.s32 224, %v2471_v20 }
 0x125   : > { %v425_v63 = vsub.s32 %v298_v22, %v2554_v12  ;;  %vm1295_vm12 = vcmp.eq.s32.totalorder %v423_v23, %v2690_v11  ;;  %v424_v1 = vsub.s32 %v298_v22, %v2595_v28  ;;  %vm1294_vm8 = vcmp.eq.s32.totalorder %v422_v5, %v2815_v37 }
 0x126   : > { %v1874_v14 = vpack.c.bf16 %v1176_v8, %v1174_v48  ;;  %vm539_vm6 = vcmp.eq.s32.totalorder %v423_v23, 0  ;;  %vm667_vm4 = vcmp.eq.s32.totalorder %v423_v23, 1  ;;  %vm859_vm0 = vcmp.eq.s32.totalorder %v423_v23, 16 }
 0x127   : > { %vm1297_vm9 = vcmp.eq.s32.totalorder %v425_v63, %v2690_v11  ;;  %vm1296_vm1 = vcmp.eq.s32.totalorder %v424_v1, %v2815_v37  ;;  %vm541_vm15 = vcmp.eq.s32.totalorder %v425_v63, 0  ;;  %v603_v45 = vsel %vm539_vm6, %v2598_v29, 0.0 }
 0x128   : > { %1875 = vmatpush1.bf16.msra.mxu0 %v1874_v14  ;;  %vm1965_vm7 = vmpackc.low %vm1297_vm9, %vm1295_vm12  ;;  %v605_v46 = vsel %vm541_vm15, %v2598_v29, 0.0  ;;  %vm669_vm5 = vcmp.eq.s32.totalorder %v425_v63, 1  ;;  %v731_v38 = vsel %vm667_vm4, %v2610_v31, 0.0  ;;  %vm861_vm11 = vcmp.eq.s32.totalorder %v425_v63, 16 }
 0x129   : > { %1966 = vmatprep.subr.msk.bf16.mxu1 %vm1965_vm7, %v2717_v30  ;;  %vm1968_vm10 = vmpackc.low %vm1296_vm1, %vm1294_vm8  ;;  %v733_v24 = vsel %vm669_vm5, %v2610_v31, 0.0  ;;  %v795_v39 = vadd.f32 %v731_v38, %v603_v45  ;;  %v923_v43 = vsel %vm859_vm0, %v2619_v33, 0.0  ;;  %v925_v40 = vsel %vm861_vm11, %v2619_v33, 0.0 }
 0x12a   : > { %1969 = vmatpush1.bf16.msk.msra.mxu1 %vm1968_vm10, %v2830_v44  ;;  %v797_v9 = vadd.f32 %v733_v24, %v605_v46  ;;  %vm1051_vm13 = vcmp.eq.s32.totalorder %v423_v23, 17  ;;  %vm1053_vm3 = vcmp.eq.s32.totalorder %v425_v63, 17  ;;  %vm538_vm2 = vcmp.eq.s32.totalorder %v422_v5, 0 }
 0x12b   : > { %v987_v42 = vadd.f32 %v923_v43, %v795_v39  ;;  %v1115_v25 = vsel %vm1051_vm13, %v2628_v35, 0.0  ;;  %v1117_v4 = vsel %vm1053_vm3, %v2628_v35, 0.0  ;;  %vm540_vm14 = vcmp.eq.s32.totalorder %v424_v1, 0 }
 0x12c   : > { %v989_v60 = vadd.f32 %v925_v40, %v797_v9  ;;  %v602_v27 = vsel %vm538_vm2, %v2738_v32, 0.0  ;;  %v604_v62 = vsel %vm540_vm14, %v2738_v32, 0.0  ;;  %vm666_vm12 = vcmp.eq.s32.totalorder %v422_v5, 1 }
 0x12d   : > { %v1179_v34 = vadd.f32 %v1115_v25, %v987_v42  ;;  %vm668_vm8 = vcmp.eq.s32.totalorder %v424_v1, 1  ;;  %v730_v36 = vsel %vm666_vm12, %v2748_v54, 0.0  ;;  %vm858_vm6 = vcmp.eq.s32.totalorder %v422_v5, 16 }
 0x12e   : > { %v1181_v41 = vadd.f32 %v1117_v4, %v989_v60  ;;  %v732_v58 = vsel %vm668_vm8, %v2748_v54, 0.0  ;;  %v794_v21 = vadd.f32 %v730_v36, %v602_v27  ;;  %vm860_vm4 = vcmp.eq.s32.totalorder %v424_v1, 16 }
 0x12f   : > { %v796_v57 = vadd.f32 %v732_v58, %v604_v62  ;;  %v922_v49 = vsel %vm858_vm6, %v2761_v61, 0.0  ;;  %v924_v59 = vsel %vm860_vm4, %v2761_v61, 0.0  ;;  %vm1050_vm0 = vcmp.eq.s32.totalorder %v422_v5, 17 }
 0x130   : > { %v1876_v6 = vpack.c.bf16 %v1181_v41, %v1179_v34  ;;  %v986_v55 = vadd.f32 %v922_v49, %v794_v21  ;;  %vm1052_vm9 = vcmp.eq.s32.totalorder %v424_v1, 17  ;;  %v1114_v56 = vsel %vm1050_vm0, %v2773_v2, 0.0 }
 0x131   : > { %v988_v7 = vadd.f32 %v924_v59, %v796_v57  ;;  %v1116_v53 = vsel %vm1052_vm9, %v2773_v2, 0.0  ;;  %v427_v10 = vsub.s32 %v3188_v47, %v2554_v12  ;;  %v429_v50 = vsub.s32 %v300_v26, %v2554_v12 }
 0x132   : > { %1877 = vmatprep.subr.bf16.mxu0 %v1876_v6  ;;  %v1178_v3 = vadd.f32 %v1114_v56, %v986_v55  ;;  %v426_v13 = vsub.s32 %v3188_v47, %v2595_v28  ;;  %v428_v15 = vsub.s32 %v300_v26, %v2595_v28  ;;  %v302_v51 = vadd.s32 232, %v2471_v20 }
 0x133   : > { %v1180_v16 = vadd.f32 %v1116_v53, %v988_v7  ;;  %vm1299_vm1 = vcmp.eq.s32.totalorder %v427_v10, %v2690_v11  ;;  %vm1301_vm15 = vcmp.eq.s32.totalorder %v429_v50, %v2690_v11  ;;  %vm543_vm7 = vcmp.eq.s32.totalorder %v427_v10, 0 }
 0x134   : > { %vm1971_vm5 = vmpackc.low %vm1301_vm15, %vm1299_vm1  ;;  %vm1298_vm11 = vcmp.eq.s32.totalorder %v426_v13, %v2815_v37  ;;  %vm1300_vm10 = vcmp.eq.s32.totalorder %v428_v15, %v2815_v37  ;;  %vm545_vm13 = vcmp.eq.s32.totalorder %v429_v50, 0  ;;  %v607_v52 = vsel %vm543_vm7, %v2598_v29, 0.0 }
 0x135   : > { %v1878_v17 = vpack.c.bf16 %v1180_v16, %v1178_v3  ;;  %1972 = vmatprep.subr.msk.bf16.mxu1 %vm1971_vm5, %v2717_v30  ;;  %vm1974_vm3 = vmpackc.low %vm1300_vm10, %vm1298_vm11  ;;  %v609_v18 = vsel %vm545_vm13, %v2598_v29, 0.0  ;;  %vm671_vm2 = vcmp.eq.s32.totalorder %v427_v10, 1  ;;  %vm673_vm14 = vcmp.eq.s32.totalorder %v429_v50, 1 }
 0x136   : > { %1975 = vmatpush1.bf16.msk.msra.mxu1 %vm1974_vm3, %v2830_v44  ;;  %v735_v22 = vsel %vm671_vm2, %v2610_v31, 0.0  ;;  %v737_v23 = vsel %vm673_vm14, %v2610_v31, 0.0  ;;  %vm863_vm12 = vcmp.eq.s32.totalorder %v427_v10, 16  ;;  %vm865_vm8 = vcmp.eq.s32.totalorder %v429_v50, 16 }
 0x137   : > { %1879 = vmatpush1.bf16.msra.mxu0 %v1878_v17  ;;  %v799_v5 = vadd.f32 %v735_v22, %v607_v52  ;;  %v801_v47 = vadd.f32 %v737_v23, %v609_v18  ;;  %v927_v48 = vsel %vm863_vm12, %v2619_v33, 0.0  ;;  %v929_v8 = vsel %vm865_vm8, %v2619_v33, 0.0 }
 0x138   : > { %vm1055_vm6 = vcmp.eq.s32.totalorder %v427_v10, 17  ;;  %vm1057_vm4 = vcmp.eq.s32.totalorder %v429_v50, 17  ;;  %vm542_vm0 = vcmp.eq.s32.totalorder %v426_v13, 0  ;;  %vm544_vm9 = vcmp.eq.s32.totalorder %v428_v15, 0 }
 0x139   : > { %v991_v26 = vadd.f32 %v927_v48, %v799_v5  ;;  %v993_v63 = vadd.f32 %v929_v8, %v801_v47  ;;  %v1119_v1 = vsel %vm1055_vm6, %v2628_v35, 0.0  ;;  %v1121_v14 = vsel %vm1057_vm4, %v2628_v35, 0.0 }
 0x13a   : > { %v606_v45 = vsel %vm542_vm0, %v2738_v32, 0.0  ;;  %v608_v46 = vsel %vm544_vm9, %v2738_v32, 0.0  ;;  %vm670_vm1 = vcmp.eq.s32.totalorder %v426_v13, 1  ;;  %vm672_vm15 = vcmp.eq.s32.totalorder %v428_v15, 1 }
 0x13b   : > { %v1183_v38 = vadd.f32 %v1119_v1, %v991_v26  ;;  %v1185_v24 = vadd.f32 %v1121_v14, %v993_v63  ;;  %v734_v39 = vsel %vm670_vm1, %v2748_v54, 0.0  ;;  %v736_v43 = vsel %vm672_vm15, %v2748_v54, 0.0  ;;  %v3284_v1 = vld [vmem:[%s2444_s12] sm:$0xff]  ;;  %s2127_s12 = scalar_lea.vmem %s2126_s27, 64 }
 0x13c   : > { %v798_v40 = vadd.f32 %v734_v39, %v606_v45  ;;  %v800_v9 = vadd.f32 %v736_v43, %v608_v46  ;;  %vm862_vm7 = vcmp.eq.s32.totalorder %v426_v13, 16  ;;  %vm864_vm5 = vcmp.eq.s32.totalorder %v428_v15, 16  ;;  %p2129_p5 = scmp.lt.s32.totalorder %s2127_s12, %s2121_s30 }
 0x13d   : > { %v1880_v42 = vpack.c.bf16 %v1185_v24, %v1183_v38  ;;  %v926_v25 = vsel %vm862_vm7, %v2761_v61, 0.0  ;;  %v928_v4 = vsel %vm864_vm5, %v2761_v61, 0.0  ;;  %vm1054_vm11 = vcmp.eq.s32.totalorder %v426_v13, 17 }
 0x13e   : > { %v990_v60 = vadd.f32 %v926_v25, %v798_v40  ;;  %v992_v27 = vadd.f32 %v928_v4, %v800_v9  ;;  %vm1056_vm10 = vcmp.eq.s32.totalorder %v428_v15, 17  ;;  %v1118_v62 = vsel %vm1054_vm11, %v2773_v2, 0.0  ;;  %p2130_p11 = por %p2129_p5, %p2128_p3 }
 0x13f   : > { %1881 = vmatprep.subr.bf16.mxu0 %v1880_v42  ;;  %v1120_v34 = vsel %vm1056_vm10, %v2773_v2, 0.0  ;;  %v431_v36 = vsub.s32 %v3192_v19, %v2554_v12  ;;  %v433_v41 = vsub.s32 %v302_v51, %v2554_v12  ;;  %v430_v58 = vsub.s32 %v3192_v19, %v2595_v28 }
 0x140   : > { %v1182_v21 = vadd.f32 %v1118_v62, %v990_v60  ;;  %v1184_v57 = vadd.f32 %v1120_v34, %v992_v27  ;;  %v432_v49 = vsub.s32 %v302_v51, %v2595_v28  ;;  %v303_v59 = vadd.s32 240, %v2471_v20  ;;  %p2131_p13 = pnand %p2130_p11, %p2124_p0 }
 0x141   : > { %vm1303_vm13 = vcmp.eq.s32.totalorder %v431_v36, %v2690_v11  ;;  %vm1305_vm3 = vcmp.eq.s32.totalorder %v433_v41, %v2690_v11  ;;  %vm1302_vm2 = vcmp.eq.s32.totalorder %v430_v58, %v2815_v37  ;;  %vm547_vm14 = vcmp.eq.s32.totalorder %v431_v36, 0 }
 0x142   : > { %v1882_v6 = vpack.c.bf16 %v1184_v57, %v1182_v21  ;;  %vm1977_vm12 = vmpackc.low %vm1305_vm3, %vm1303_vm13  ;;  %vm1304_vm8 = vcmp.eq.s32.totalorder %v432_v49, %v2815_v37  ;;  %vm549_vm6 = vcmp.eq.s32.totalorder %v433_v41, 0  ;;  %v611_v19 = vsel %vm547_vm14, %v2598_v29, 0.0 }
 0x143   : > { %1978 = vmatprep.subr.msk.bf16.mxu1 %vm1977_vm12, %v2717_v30  ;;  %vm1980_vm4 = vmpackc.low %vm1304_vm8, %vm1302_vm2  ;;  %v613_v55 = vsel %vm549_vm6, %v2598_v29, 0.0  ;;  %vm675_vm0 = vcmp.eq.s32.totalorder %v431_v36, 1  ;;  %vm677_vm9 = vcmp.eq.s32.totalorder %v433_v41, 1  ;;  %vm867_vm1 = vcmp.eq.s32.totalorder %v431_v36, 16 }
 0x144   : > { %1883 = vmatpush1.bf16.msra.mxu0 %v1882_v6  ;;  %1981 = vmatpush1.bf16.msk.msra.mxu1 %vm1980_vm4, %v2830_v44  ;;  %v739_v56 = vsel %vm675_vm0, %v2610_v31, 0.0  ;;  %v741_v7 = vsel %vm677_vm9, %v2610_v31, 0.0  ;;  %vm869_vm15 = vcmp.eq.s32.totalorder %v433_v41, 16  ;;  %v931_v53 = vsel %vm867_vm1, %v2619_v33, 0.0 }
 0x145   : > { %v803_v10 = vadd.f32 %v739_v56, %v611_v19  ;;  %v805_v50 = vadd.f32 %v741_v7, %v613_v55  ;;  %v933_v3 = vsel %vm869_vm15, %v2619_v33, 0.0  ;;  %vm1059_vm7 = vcmp.eq.s32.totalorder %v431_v36, 17 }
 0x146   : > { %vm1061_vm5 = vcmp.eq.s32.totalorder %v433_v41, 17  ;;  %v1123_v13 = vsel %vm1059_vm7, %v2628_v35, 0.0  ;;  %vm546_vm11 = vcmp.eq.s32.totalorder %v430_v58, 0  ;;  %vm548_vm10 = vcmp.eq.s32.totalorder %v432_v49, 0 }
 0x147   : > { %v995_v15 = vadd.f32 %v931_v53, %v803_v10  ;;  %v997_v51 = vadd.f32 %v933_v3, %v805_v50  ;;  %v1125_v16 = vsel %vm1061_vm5, %v2628_v35, 0.0  ;;  %v610_v52 = vsel %vm546_vm11, %v2738_v32, 0.0 }
 0x148   : > { %v612_v17 = vsel %vm548_vm10, %v2738_v32, 0.0  ;;  %vm674_vm13 = vcmp.eq.s32.totalorder %v430_v58, 1  ;;  %vm676_vm3 = vcmp.eq.s32.totalorder %v432_v49, 1  ;;  %vm866_vm2 = vcmp.eq.s32.totalorder %v430_v58, 16 }
 0x149   : > { %v1187_v18 = vadd.f32 %v1123_v13, %v995_v15  ;;  %v1189_v22 = vadd.f32 %v1125_v16, %v997_v51  ;;  %v738_v23 = vsel %vm674_vm13, %v2748_v54, 0.0  ;;  %v740_v5 = vsel %vm676_vm3, %v2748_v54, 0.0 }
 0x14a   : > { %v802_v47 = vadd.f32 %v738_v23, %v610_v52  ;;  %v804_v48 = vadd.f32 %v740_v5, %v612_v17  ;;  %vm868_vm14 = vcmp.eq.s32.totalorder %v432_v49, 16  ;;  %v930_v8 = vsel %vm866_vm2, %v2761_v61, 0.0 }
 0x14b   : > { %v1884_v26 = vpack.c.bf16 %v1189_v22, %v1187_v18  ;;  %v932_v63 = vsel %vm868_vm14, %v2761_v61, 0.0  ;;  %vm1058_vm12 = vcmp.eq.s32.totalorder %v430_v58, 17  ;;  %vm1060_vm8 = vcmp.eq.s32.totalorder %v432_v49, 17 }
 0x14c   : > { %v994_v14 = vadd.f32 %v930_v8, %v802_v47  ;;  %v996_v45 = vadd.f32 %v932_v63, %v804_v48  ;;  %v1122_v46 = vsel %vm1058_vm12, %v2773_v2, 0.0  ;;  %v1124_v38 = vsel %vm1060_vm8, %v2773_v2, 0.0 }
 0x14d   : > { %1885 = vmatprep.subr.bf16.mxu0 %v1884_v26  ;;  %v304_v24 = vadd.s32 248, %v2471_v20  ;;  %v435_v39 = vsub.s32 %v303_v59, %v2554_v12  ;;  %v3291_v43 = vsub.s32 %v303_v59, %v2595_v28  ;;  %v1458_v40 = vsub.s32 0, %v2471_v20 }
 0x14e   : > { %v1186_v9 = vadd.f32 %v1122_v46, %v994_v14  ;;  %v1188_v42 = vadd.f32 %v1124_v38, %v996_v45  ;;  %v1462_v25 = vsub.s32 1, %v2471_v20  ;;  %v1377_v4 = vcombine.high %v3284_v1, %v3284_v1 }
 0x14f   : > { %v437_v60 = vsub.s32 %v304_v24, %v2554_v12  ;;  %vm1307_vm6 = vcmp.eq.s32.totalorder %v435_v39, %v2690_v11  ;;  %v436_v27 = vsub.s32 %v304_v24, %v2595_v28  ;;  %vm1306_vm4 = vcmp.eq.s32.totalorder %v3291_v43, %v2815_v37  ;;  %v1375_v12 = vld [vmem:[%s269_s5] sm:$0x3] }
 0x150   : > { %v1886_v62 = vpack.c.bf16 %v1188_v42, %v1186_v9  ;;  %vm551_vm0 = vcmp.eq.s32.totalorder %v435_v39, 0  ;;  %vm679_vm9 = vcmp.eq.s32.totalorder %v435_v39, 1  ;;  %vm871_vm1 = vcmp.eq.s32.totalorder %v435_v39, 16  ;;  %1443 = vmatprep.mubr.f32.mxu0 %v1377_v4 }
 0x151   : > { %vm1309_vm15 = vcmp.eq.s32.totalorder %v437_v60, %v2690_v11  ;;  %vm1308_vm7 = vcmp.eq.s32.totalorder %v436_v27, %v2815_v37  ;;  %vm553_vm5 = vcmp.eq.s32.totalorder %v437_v60, 0  ;;  %v615_v34 = vsel %vm551_vm0, %v2598_v29, 0.0 }
 0x152   : > { %1887 = vmatpush1.bf16.msra.mxu0 %v1886_v62  ;;  %vm1983_vm11 = vmpackc.low %vm1309_vm15, %vm1307_vm6  ;;  %v617_v28 = vsel %vm553_vm5, %v2598_v29, 0.0  ;;  %vm681_vm10 = vcmp.eq.s32.totalorder %v437_v60, 1  ;;  %v743_v36 = vsel %vm679_vm9, %v2610_v31, 0.0  ;;  %vm873_vm13 = vcmp.eq.s32.totalorder %v437_v60, 16 }
 0x153   : > { %1984 = vmatprep.subr.msk.bf16.mxu1 %vm1983_vm11, %v2717_v30  ;;  %vm1986_vm3 = vmpackc.low %vm1308_vm7, %vm1306_vm4  ;;  %v745_v11 = vsel %vm681_vm10, %v2610_v31, 0.0  ;;  %v807_v41 = vadd.f32 %v743_v36, %v615_v34  ;;  %v935_v58 = vsel %vm871_vm1, %v2619_v33, 0.0  ;;  %v937_v21 = vsel %vm873_vm13, %v2619_v33, 0.0 }
 0x154   : > { %1987 = vmatpush1.bf16.msk.msra.mxu1 %vm1986_vm3, %v2830_v44  ;;  %v809_v29 = vadd.f32 %v745_v11, %v617_v28  ;;  %vm1063_vm2 = vcmp.eq.s32.totalorder %v435_v39, 17  ;;  %vm1065_vm14 = vcmp.eq.s32.totalorder %v437_v60, 17  ;;  %v1459_v57 = vrot.slane %v1375_v12, %v1458_v40 }
 0x155   : > { %v999_v49 = vadd.f32 %v935_v58, %v807_v41  ;;  %v1127_v30 = vsel %vm1063_vm2, %v2628_v35, 0.0  ;;  %v1129_v37 = vsel %vm1065_vm14, %v2628_v35, 0.0  ;;  %v1463_v59 = vrot.slane %v1375_v12, %v1462_v25 }
 0x156   : > { %v1001_v6 = vadd.f32 %v937_v21, %v809_v29  ;;  %vm550_vm12 = vcmp.eq.s32.totalorder %v3291_v43, 0  ;;  %vm552_vm8 = vcmp.eq.s32.totalorder %v436_v27, 0  ;;  %vm678_vm6 = vcmp.eq.s32.totalorder %v3291_v43, 1 }
 0x157   : > { %v1191_v31 = vadd.f32 %v1127_v30, %v999_v49  ;;  %1530 = vmatprep.mubr.f32.mxu1 %v1463_v59  ;;  %v614_v33 = vsel %vm550_vm12, %v2738_v32, 0.0  ;;  %v616_v44 = vsel %vm552_vm8, %v2738_v32, 0.0  ;;  %vm680_vm4 = vcmp.eq.s32.totalorder %v436_v27, 1 }
 0x158   : > { %v1193_v19 = vadd.f32 %v1129_v37, %v1001_v6  ;;  %v742_v55 = vsel %vm678_vm6, %v2748_v54, 0.0  ;;  %v744_v56 = vsel %vm680_vm4, %v2748_v54, 0.0  ;;  %vm870_vm0 = vcmp.eq.s32.totalorder %v3291_v43, 16  ;;  %1531 = vmatmul.mubr.f32.vlgmr.msra.gmra.mrb[0].mxu1 %v1459_v57 }
 0x159   : > { %v806_v35 = vadd.f32 %v742_v55, %v614_v33  ;;  %v808_v7 = vadd.f32 %v744_v56, %v616_v44  ;;  %vm872_vm9 = vcmp.eq.s32.totalorder %v436_v27, 16  ;;  %v934_v53 = vsel %vm870_vm0, %v2761_v61, 0.0 }
 0x15a   : > { %v1888_v10 = vpack.c.bf16 %v1193_v19, %v1191_v31  ;;  %v936_v50 = vsel %vm872_vm9, %v2761_v61, 0.0  ;;  %vm1062_vm1 = vcmp.eq.s32.totalorder %v3291_v43, 17  ;;  %vm1064_vm15 = vcmp.eq.s32.totalorder %v436_v27, 17 }
 0x15b   : > { %v998_v32 = vadd.f32 %v934_v53, %v806_v35  ;;  %v1000_v3 = vadd.f32 %v936_v50, %v808_v7  ;;  %v1126_v13 = vsel %vm1062_vm1, %v2773_v2, 0.0  ;;  %v1128_v54 = vsel %vm1064_vm15, %v2773_v2, 0.0 }
 0x15c   : > { %1889 = vmatprep.subr.bf16.mxu0 %v1888_v10  ;;  %v2245_v52 = vmov 1966171168   ;;  %vm1557_vm7 = vcmp.lt.s32.totalorder %v272_v0, 256 }
 0x15d   : > { %v1190_v15 = vadd.f32 %v1126_v13, %v998_v32  ;;  %v1192_v51 = vadd.f32 %v1128_v54, %v1000_v3  ;;  %v1541_v61 = vunpack.c.l.s4 %v2245_v52 }
 0x15f   : > { %v1890_v16 = vpack.c.bf16 %v1192_v51, %v1190_v15  ;;  %v1542_v17 = vunpack.c.0.s8 %v1541_v61 }
 0x161   : > { %1891 = vmatpush1.bf16.msra.mxu0 %v1890_v16  ;;  %v1545_v22 = vsub.s32 %v1542_v17, %v2471_v20 }
 0x164   : > { %1444 = vmatmul.mubr.f32.vlgmr.msra.gmra.mrb[0].mxu0 %v3284_v1 }
 0x22b   : > { %v1532_v18 = vpop.f32.mrb[0].mxu1 }
 0x22c   : > { %v1534_v23 = vpop.f32.mrb[1].mxu1 }
 0x22d   : > { %v1539_v5 = vcombine.low %v1532_v18, %v1534_v23 }
 0x22f   : > { %v1546_v2 = vrot.slane %v1539_v5, %v1545_v22 }
 0x231   : > { %v1553_v47 = vrot.slane %v1546_v2, %v1545_v22 }
 0x233   : > { %1559 = vst.msk [vmem:[%s265_s22] sm:$0x3] %vm1557_vm7, %v1553_v47 }
 0x234   : > { %2134 = shalt.err (!%p2131_p13)
}
 0x235   : > { %s2135_s13 = scalar_lea.hbm %s3341_s24, 32  ;;  %s2139_s25 = scalar_lea.hbm %s3426_s4, 64 }
 0x236   : > { %p2136_p7 = scmp.ne.s32.totalorder %s3341_s24, %s2135_s13  ;;  %p2140_p9 = scmp.lt.u32.totalorder %s3341_s24, %s3426_s4 }
 0x237   : > { %p2141_p1 = scmp.lt.u32.totalorder %s2139_s25, %s2135_s13  ;;  %p2143_p8 = scmp.lt.u32.totalorder %s2135_s13, %s3341_s24 }
 0x238   : > { %p2137_p10 = pnand %p2136_p7, %p3474_p2 }
 0x239   : > { %p2142_p4 = por %p2141_p1, %p2140_p9 }
 0x23a   : > { %p2138_p6 = pneg %p2137_p10 }
 0x23b   : > { %p2144_p12 = por %p2143_p8, %p2142_p4 }
 0x23d   : > { %p2145_p0 = pnand %p2144_p12, %p2138_p6 }
 0x23f   : > { %2148 = shalt.err (!%p2145_p0)
}
 0x240   : > { %2003 = dma.vmem_to_hbm [thread:$0]  (%p3474_p2), %s3343_s10, 32, %s3341_s24, %s1566_s6   ;;  %v1445_v0 = vpop.f32.mrb[0].mxu0 }
 0x241   : > { %s258_s11 = scalar_lea.vmem [#allocation7], %s1748_s14  ;;  %v1447_v20 = vpop.f32.mrb[1].mxu0  ;;  %s3373_s12 = scalar_lea.hbm %s3425_s3, %s2451_s23 }
 0x242   : > { %s1582_s30 = sshll.u32 %s258_s11, 4  ;;  %v1452_v48 = vcombine.low %v1445_v0, %v1447_v20  ;;  %s1561_s13 = scalar_lea.sflag [#allocation4], %s2438_s21  ;;  %s3375_s30 = int_to_ptr.vmem [resolvable:$true] %s1582_s30 }
 0x243   : > { %s2149_s5 = scalar_lea.vmem %s3375_s30, 128  ;;  %s2247_s14 = smov [#allocation7]  }
 0x244   : > { %1454 = vst [vmem:[%s258_s11] sm:$0xff] %v1452_v48  ;;  %p2150_p3 = scmp.ne.s32.totalorder %s3375_s30, %s2149_s5  ;;  %s2153_s10 = sshll.u32 %s2247_s14, 4  ;;  %s2154_s10 = int_to_ptr.vmem [resolvable:$false] %s2153_s10 }
 0x245   : > { %s2155_s24 = scalar_lea.vmem %s2154_s10, 256  ;;  %p2156_p13 = scmp.lt.s32.totalorder %s3375_s30, %s2154_s10 }
 0x246   : > { %p2151_p5 = pnand %p2150_p3, %p3474_p2  ;;  %p2157_p7 = scmp.lt.s32.totalorder %s2155_s24, %s2149_s5 }
 0x248   : > { %p2152_p11 = pneg %p2151_p5  ;;  %p2158_p10 = por %p2157_p7, %p2156_p13 }
 0x24a   : > { %p2159_p6 = pnand %p2158_p10, %p2152_p11 }
 0x24c   : > { %2162 = shalt.err (!%p2159_p6)
}
 0x24d   : > { %s2163_s21 = scalar_lea.hbm %s3373_s12, 128  ;;  %s2167_s9 = scalar_lea.hbm %s3425_s3, 256 }
 0x24e   : > { %p2164_p9 = scmp.ne.s32.totalorder %s3373_s12, %s2163_s21  ;;  %p2168_p8 = scmp.lt.u32.totalorder %s3373_s12, %s3425_s3 }
 0x24f   : > { %p2169_p12 = scmp.lt.u32.totalorder %s2167_s9, %s2163_s21  ;;  %p2171_p3 = scmp.lt.u32.totalorder %s2163_s21, %s3373_s12 }
 0x250   : > { %p2165_p1 = pnand %p2164_p9, %p3474_p2 }
 0x251   : > { %p2170_p0 = por %p2169_p12, %p2168_p8 }
 0x252   : > { %p2166_p4 = pneg %p2165_p1 }
 0x253   : > { %p2172_p5 = por %p2171_p3, %p2170_p0 }
 0x255   : > { %p2173_p11 = pnand %p2172_p5, %p2166_p4 }
 0x257   : > { %2176 = shalt.err (!%p2173_p11)
}
 0x258   : > { %2002 = dma.vmem_to_hbm [thread:$0]  (%p3474_p2), %s3375_s30, 128, %s3373_s12, %s1561_s13  }
 0x259 PF: > { %s1610_s7 = sand.u32 1, %s2219_s15   ;;  %p3475_p13 = scmp.ne.s32.totalorder %s3434_s26, 0 }
 0x25a   : > { %p3476_p7 = scmp.ge.s32.totalorder %s2239_s20, 2  ;;  %s1611_s11 = scalar_lea.sflag [#allocation4], %s1610_s7 }
 0x25c   : > { %p2015_p10 = pnand %p3476_p7, %p3475_p13 }
 0x25e   : > { %2210 = dma.done.wait (!%p2015_p10), %s1611_s11, 128  }
 0x25f   : > { %2212 = vsyncadd (!%p2015_p10), %s1611_s11, 4294967168  ;;  %s1620_s18 = scalar_lea.sflag [#allocation9], %s1610_s7 }
 0x260   : > { %2214 = dma.done.wait (!%p2015_p10), %s1620_s18, 32  }
 0x261   : > { %2216 = vsyncadd (!%p2015_p10), %s1620_s18, 4294967264  ;;  %s25_s20 = sadd.s32 1, %s2239_s20   ;;  %s3477_s15 = smov %s2223_s16 }
 0x262   : > { %p22_p6 = scmp.ge.s32.totalorder %s25_s20, 4   ;;  %s3478_s16 = smov %s2227_s17 }
 0x263   : > { %s3479_s17 = smov %s2390_s8  ;;  %s3480_s18 = smov %s2235_s19 }
 0x264   : > { %s3481_s19 = smov %s3483_s28  ;;  %24 = sbr.rel (!%p22_p6) target bundleno = 9 (0x9), region = 102 }
 0x26b   :  { %1625 = vsyncpa [#allocation3], 1 }
 0x26c   :  { %1627 = vsyncpa [#allocation3 + $0x1], 1 }
 0x26d   :  { %1628 = vsyncpa [#allocation4], 1 }
 0x26e   :  { %1630 = vsyncpa [#allocation4 + $0x1], 1 }
 0x26f   :  { %1631 = vsyncpa [#allocation9], 1 }
 0x270   :  { %1633 = vsyncpa [#allocation9 + $0x1], 1 }
 0x271   :  { %1634 = vsyncpa [#allocation5], 1 }
 0x272   :  { %1636 = vsyncpa [#allocation5 + $0x1], 1 }

</bundles_post_ra>
